<compile_context>
chip_gen: v7x
topology: tpu7x:2x2x1
jax: 0.10.0
libtpu: 0.0.40
codegen_flags: <defaults>
</compile_context>

<pallas_src>
import functools

import jax
import jax.numpy as jnp
from jax import lax
from jax.experimental import pallas as pl
from jax.experimental.pallas import tpu as pltpu


# ---------------------------------------------------------------------------
# Chip-conditional limits
# ---------------------------------------------------------------------------
def _query_vmem_capacity():
    try:
        info = pltpu.get_tpu_info()
        cap = getattr(info, "vmem_capacity_bytes", None)
        if cap:
            return int(cap)
    except Exception:
        pass
    return 64 * 1024 * 1024  # conservative fallback (v7x-sized VMEM)


_VMEM_CAP = _query_vmem_capacity()
VMEM_LIMIT = max(32 * 1024 * 1024, min(100 * 1024 * 1024, (_VMEM_CAP * 3) // 4))
_BIG_VMEM = _VMEM_CAP >= 100 * 1024 * 1024  # v5e/v6e (128 MiB) vs v7x (64 MiB)

TM_CAP = 512 if _BIG_VMEM else 256    # row tile for projection matmuls
TN_CAP = 512                          # output-dim tile
TK_CAP = 1024 if _BIG_VMEM else 512   # reduction-dim tile
TQ_CAP = 256                          # attention query-row tile
TKV_CAP = 512 if _BIG_VMEM else 256   # attention key/value tile


def _pick_tile(dim, cap, align):
    """Largest tile <= cap dividing dim (preferring 128-multiples); full dim if small."""
    if dim <= cap:
        return dim
    steps = []
    for s in (128, align):
        if s <= cap and s not in steps:
            steps.append(s)
    for step in steps:
        t = (cap // step) * step
        while t >= step:
            if dim % t == 0:
                return t
            t -= step
    return dim  # fallback: full extent (always legal)


# ---------------------------------------------------------------------------
# Kernel 1: fused Q/K/V projection   q = (xq @ Wq^T + bq) * q_scale   (etc.)
#   grid = (M tiles, N tiles, K tiles); bf16 outputs, f32 accumulator scratch.
#   Accepts 1 shared activation (self-attention) or 3 distinct activations.
# ---------------------------------------------------------------------------
def qkv_proj_kernel(*refs, n_x, q_scale):
    x_refs = refs[:n_x]
    (wq_ref, wk_ref, wv_ref, bq_ref, bk_ref, bv_ref,
     oq_ref, ok_ref, ov_ref, acc_ref) = refs[n_x:]
    kk = pl.program_id(2)

    @pl.when(kk == 0)
    def _init():
        acc_ref[...] = jnp.zeros_like(acc_ref)

    xs = [r[...].astype(jnp.bfloat16) for r in x_refs]   # (tm, tk) bf16
    while len(xs) < 3:
        xs.append(xs[0])                                  # shared-activation path

    # TODO(synk): on v5e, check lower_as_mlir for XLU transposes of (tn, tk) weight
    # tiles; if present, materialize transposed weights once at init.
    for idx, w_ref in enumerate((wq_ref, wk_ref, wv_ref)):
        acc_ref[idx] += lax.dot_general(
            xs[idx], w_ref[...].astype(jnp.bfloat16),
            (((1,), (1,)), ((), ())), preferred_element_type=jnp.float32)

    @pl.when(kk == pl.num_programs(2) - 1)
    def _finalize():
        # 1/sqrt(head_dim) folded into Q here (instead of per-(tq,S) multiplies later)
        oq_ref[...] = ((acc_ref[0] + bq_ref[...]) * q_scale).astype(oq_ref.dtype)
        ok_ref[...] = (acc_ref[1] + bk_ref[...]).astype(ok_ref.dtype)
        ov_ref[...] = (acc_ref[2] + bv_ref[...]).astype(ov_ref.dtype)


def pallas_qkv_proj(xs, params, q_scale):
    """xs: tuple of 1 (shared) or 3 activations, each (M, D). Returns bf16 (q, k, v)."""
    n_x = len(xs)
    M, D = xs[0].shape
    tm = _pick_tile(M, TM_CAP, 8)
    tn = _pick_tile(D, TN_CAP, 128)
    tk = _pick_tile(D, TK_CAP, 128)
    grid = (M // tm, D // tn, D // tk)

    x_spec = pl.BlockSpec((tm, tk), lambda i, j, k: (i, k))
    w_spec = pl.BlockSpec((tn, tk), lambda i, j, k: (j, k))
    b_spec = pl.BlockSpec((1, tn), lambda i, j, k: (0, j))
    o_spec = pl.BlockSpec((tm, tn), lambda i, j, k: (i, j))
    out_sds = jax.ShapeDtypeStruct((M, D), jnp.bfloat16)

    bq = params["bq"].reshape(1, D)
    bk = params["bk"].reshape(1, D)
    bv = params["bv"].reshape(1, D)

    kernel = functools.partial(qkv_proj_kernel, n_x=n_x, q_scale=q_scale)
    return pl.pallas_call(
        kernel,
        out_shape=(out_sds, out_sds, out_sds),
        grid=grid,
        in_specs=[x_spec] * n_x + [w_spec] * 3 + [b_spec] * 3,
        out_specs=(o_spec, o_spec, o_spec),
        scratch_shapes=[pltpu.VMEM((3, tm, tn), jnp.float32)],
        compiler_params=pltpu.CompilerParams(
            dimension_semantics=("parallel", "parallel", "arbitrary"),
            vmem_limit_bytes=VMEM_LIMIT),
    )(*xs, params["wq"], params["wk"], params["wv"], bq, bk, bv)


# ---------------------------------------------------------------------------
# Kernel 2: output projection  y = x @ W^T + b  (f32 output, accumulate in-place)
# ---------------------------------------------------------------------------
def linear_kernel(x_ref, w_ref, b_ref, o_ref):
    # x_ref: (tm, tk)  w_ref: (tn, tk)  b_ref: (1, tn)  o_ref: (tm, tn) f32 (resident along k)
    kk = pl.program_id(2)

    @pl.when(kk == 0)
    def _init():
        o_ref[...] = jnp.zeros_like(o_ref)

    o_ref[...] += lax.dot_general(
        x_ref[...].astype(jnp.bfloat16), w_ref[...].astype(jnp.bfloat16),
        (((1,), (1,)), ((), ())), preferred_element_type=jnp.float32)

    @pl.when(kk == pl.num_programs(2) - 1)
    def _finalize():
        o_ref[...] += b_ref[...]


def pallas_linear(x, w, b):
    """x: (M, Din) f32/bf16, w: (Dout, Din) torch Linear layout, b: (Dout,). f32 output."""
    M, Din = x.shape
    Dout = w.shape[0]
    tm = _pick_tile(M, TM_CAP, 8)
    tn = _pick_tile(Dout, TN_CAP, 128)
    tk = _pick_tile(Din, TK_CAP, 128)
    grid = (M // tm, Dout // tn, Din // tk)
    b2 = b.reshape(1, Dout)
    return pl.pallas_call(
        linear_kernel,
        out_shape=jax.ShapeDtypeStruct((M, Dout), jnp.float32),
        grid=grid,
        in_specs=[
            pl.BlockSpec((tm, tk), lambda i, j, k: (i, k)),
            pl.BlockSpec((tn, tk), lambda i, j, k: (j, k)),
            pl.BlockSpec((1, tn), lambda i, j, k: (0, j)),
        ],
        out_specs=pl.BlockSpec((tm, tn), lambda i, j, k: (i, j)),
        compiler_params=pltpu.CompilerParams(
            dimension_semantics=("parallel", "parallel", "arbitrary"),
            vmem_limit_bytes=VMEM_LIMIT),
    )(x, w, b2)


# ---------------------------------------------------------------------------
# Kernel 3: flash-style scaled dot-product attention
#   grid = (batch, q-tiles, kv-tiles); all heads per grid step; online softmax
#   with f32 scratch (acc / running max / running sum); bf16 K/V/Q/context.
# ---------------------------------------------------------------------------
def attn_kernel(q_ref, k_ref, v_ref, m_ref, o_ref, acc_ref, m_sc, l_sc,
                *, n_heads, head_dim):
    # q_ref: (1, tq, D) bf16 (pre-scaled)   k_ref/v_ref: (1, tkv, D) bf16
    # m_ref: (1, tq, tkv) int8              o_ref: (1, tq, D) bf16
    # acc_ref: (tq, D) f32                  m_sc/l_sc: (tq, n_heads) f32
    j = pl.program_id(2)

    @pl.when(j == 0)
    def _init():
        acc_ref[...] = jnp.zeros_like(acc_ref)
        m_sc[...] = jnp.full_like(m_sc, -1e30)
        l_sc[...] = jnp.zeros_like(l_sc)

    q = q_ref[0]                               # (tq, D)  bf16
    k = k_ref[0]                               # (tkv, D) bf16
    v = v_ref[0]                               # (tkv, D) bf16
    masked = m_ref[0] != 0                     # (tq, tkv) bool, shared by all heads
    neg_inf = jnp.float32(-1e9)

    for h in range(n_heads):                   # static head loop; per-head state is
        lo = h * head_dim                      # committed to VMEM scratch each iter
        hi = lo + head_dim

        # scores = qh @ kh^T (scale already folded into q at the projection)
        s = lax.dot_general(q[:, lo:hi], k[:, lo:hi],
                            (((1,), (1,)), ((), ())),
                            preferred_element_type=jnp.float32)     # (tq, tkv)
        s = jnp.where(masked, neg_inf, s)

        m_prev = m_sc[:, h:h + 1]                                   # (tq, 1)
        m_new = jnp.maximum(m_prev, jnp.max(s, axis=-1, keepdims=True))
        alpha = jnp.exp(m_prev - m_new)                             # (tq, 1)
        p = jnp.exp(s - m_new)                                      # (tq, tkv) f32

        l_sc[:, h:h + 1] = alpha * l_sc[:, h:h + 1] + jnp.sum(p, axis=-1, keepdims=True)
        acc_ref[:, lo:hi] = alpha * acc_ref[:, lo:hi] + jnp.dot(
            p.astype(jnp.bfloat16), v[:, lo:hi], preferred_element_type=jnp.float32)
        m_sc[:, h:h + 1] = m_new

    @pl.when(j == pl.num_programs(2) - 1)
    def _finalize():
        # normalize after PV (one reciprocal per head), single lane-dense store
        chunks = []
        for h in range(n_heads):
            lo = h * head_dim
            inv = pl.reciprocal(l_sc[:, h:h + 1], approx=True)      # (tq, 1)
            chunks.append(acc_ref[:, lo:lo + head_dim] * inv)
        o_ref[0] = jnp.concatenate(chunks, axis=-1).astype(o_ref.dtype)


def pallas_attention(q, k, v, mask, n_heads, head_dim):
    """q/k/v: (bs, S, D) bf16 (q pre-scaled), mask: (bs, S, S) int8 (nonzero = masked)."""
    bs, S, D = q.shape
    tq = _pick_tile(S, TQ_CAP, 8)
    tkv = _pick_tile(S, TKV_CAP, 8)
    grid = (bs, S // tq, S // tkv)
    kernel = functools.partial(attn_kernel, n_heads=n_heads, head_dim=head_dim)
    return pl.pallas_call(
        kernel,
        out_shape=jax.ShapeDtypeStruct((bs, S, D), jnp.bfloat16),
        grid=grid,
        in_specs=[
            pl.BlockSpec((1, tq, D), lambda b, i, j: (b, i, 0)),    # Q (resident over kv)
            pl.BlockSpec((1, tkv, D), lambda b, i, j: (b, j, 0)),   # K tile
            pl.BlockSpec((1, tkv, D), lambda b, i, j: (b, j, 0)),   # V tile
            pl.BlockSpec((1, tq, tkv), lambda b, i, j: (b, i, j)),  # int8 mask tile
        ],
        out_specs=pl.BlockSpec((1, tq, D), lambda b, i, j: (b, i, 0)),
        scratch_shapes=[pltpu.VMEM((tq, D), jnp.float32),        # unnormalized context
                        pltpu.VMEM((tq, n_heads), jnp.float32),  # running max per head
                        pltpu.VMEM((tq, n_heads), jnp.float32)], # running sum per head
        compiler_params=pltpu.CompilerParams(
            dimension_semantics=("parallel", "parallel", "arbitrary"),
            vmem_limit_bytes=VMEM_LIMIT),
    )(q, k, v, mask)


# ---------------------------------------------------------------------------
# Full MultiHeadAttention forward
# ---------------------------------------------------------------------------
def multi_head_attention(query, key, value, attn_mask, params, n_heads,
                         shared_qkv=False):
    """query/key/value: (bs, S, D) f32; attn_mask: (bs, S, S) int (nonzero = masked)."""
    bs, S, D = query.shape
    head_dim = D // n_heads
    q_scale = 1.0 / (float(head_dim) ** 0.5)

    if shared_qkv:
        xs = (query.reshape(bs * S, D),)
    else:
        xs = (query.reshape(bs * S, D),
              key.reshape(bs * S, D),
              value.reshape(bs * S, D))

    # fused Q/K/V projections (one launch), bf16 outputs, Q pre-scaled
    q2, k2, v2 = pallas_qkv_proj(xs, params, q_scale)
    q = q2.reshape(bs, S, D)
    k = k2.reshape(bs, S, D)
    v = v2.reshape(bs, S, D)

    mask = attn_mask if attn_mask.dtype == jnp.int8 else attn_mask.astype(jnp.int8)

    # flash-style attention over all heads, (bs, S, D)-layout throughout (no transposes)
    context = pallas_attention(q, k, v, mask, n_heads, head_dim)

    # output projection; dropout(p=0) is identity
    out = pallas_linear(context.reshape(bs * S, D), params["wo"], params["bo"])
    return out.reshape(bs, S, D)


def init_params(key, d_hidden):
    ks = jax.random.split(key, 8)
    scale = 1.0 / (d_hidden ** 0.5)

    def lin(kw, kb):
        w = jax.random.uniform(kw, (d_hidden, d_hidden), jnp.float32, -scale, scale)
        b = jax.random.uniform(kb, (d_hidden,), jnp.float32, -scale, scale)
        return w, b

    wq, bq = lin(ks[0], ks[1])
    wk, bk = lin(ks[2], ks[3])
    wv, bv = lin(ks[4], ks[5])
    wo, bo = lin(ks[6], ks[7])
    return dict(wq=wq, bq=bq, wk=wk, bk=bk, wv=wv, bv=bv, wo=wo, bo=bo)


def reference_mha(query, key, value, attn_mask, params, n_heads):
    """Pure-JAX reference mirroring the PyTorch module (f32 throughout)."""
    bs, S, D = query.shape
    hd = D // n_heads
    q = query @ params["wq"].T + params["bq"]
    k = key @ params["wk"].T + params["bk"]
    v = value @ params["wv"].T + params["bv"]

    def split(t):
        return t.reshape(bs, S, n_heads, hd).transpose(0, 2, 1, 3)

    qs, ks, vs = split(q), split(k), split(v)
    scores = jnp.einsum("bhqd,bhkd->bhqk", qs, ks) / (hd ** 0.5)
    scores = jnp.where(attn_mask[:, None, :, :] != 0, jnp.float32(-1e9), scores)
    p = jax.nn.softmax(scores, axis=-1)
    ctx = jnp.einsum("bhqk,bhkd->bhqd", p, vs)
    ctx = ctx.transpose(0, 2, 1, 3).reshape(bs, S, D)
    return ctx @ params["wo"].T + params["bo"]


if __name__ == "__main__":
    bs, seq, d_hidden, n_heads = 2, 8, 32, 4

    key = jax.random.PRNGKey(0)
    k_param, k_q, k_k, k_v = jax.random.split(key, 4)

    params = init_params(k_param, d_hidden)

    query = jax.random.normal(k_q, (bs, seq, d_hidden), jnp.float32)
    key_t = jax.random.normal(k_k, (bs, seq, d_hidden), jnp.float32)
    value = jax.random.normal(k_v, (bs, seq, d_hidden), jnp.float32)

    # causal mask: 1 = masked position (matches torch masked_fill_ semantics), int8 stream
    causal = jnp.triu(jnp.ones((seq, seq), jnp.int8), k=1)
    attn_mask = jnp.broadcast_to(causal[None, :, :], (bs, seq, seq))

    fwd = jax.jit(functools.partial(multi_head_attention, n_heads=n_heads))
    out = fwd(query, key_t, value, attn_mask, params)
    jax.block_until_ready(out)

    assert out.shape == (bs, seq, d_hidden), out.shape
    assert jnp.all(jnp.isfinite(out))

    # loose sanity check vs f32 reference (kernel uses bf16 intermediates + approx recip)
    ref = reference_mha(query, key_t, value, attn_mask, params, n_heads)
    max_err = float(jnp.max(jnp.abs(out - ref)))
    assert max_err < 1e-1, f"max abs error too large: {max_err}"

    print("KERNEL_OK")
</pallas_src>

<mosaic_0001>
module attributes {stable_mosaic.version = 11 : i64} {
  func.func @linear_kernel(%arg0: i32, %arg1: i32, %arg2: i32, %arg3: memref<16x32xbf16, #tpu.memory_space<vmem>>, %arg4: memref<32x32xf32, #tpu.memory_space<vmem>>, %arg5: memref<1x32xf32, #tpu.memory_space<vmem>>, %arg6: memref<16x32xf32, #tpu.memory_space<vmem>>) attributes {dimension_semantics = [#tpu.dimension_semantics<parallel>, #tpu.dimension_semantics<parallel>, #tpu.dimension_semantics<arbitrary>], iteration_bounds = array<i64: 1, 1, 1>, scalar_prefetch = 0 : i64, scratch_operands = 0 : i64, tpu.core_type = #tpu.core_type<tc>, window_params = [{transform_indices = @transform_0, window_bounds = array<i64: 16, 32>}, {transform_indices = @transform_1, window_bounds = array<i64: 32, 32>}, {transform_indices = @transform_2, window_bounds = array<i64: 1, 32>}, {transform_indices = @transform_3, window_bounds = array<i64: 16, 32>}]} {
    %c0_i32 = arith.constant 0 : i32
    %0 = arith.cmpi eq, %arg2, %c0_i32 : i32
    %1 = arith.extui %0 : i1 to i32
    %c0_i32_0 = arith.constant 0 : i32
    %2 = arith.cmpi ne, %1, %c0_i32_0 : i32
    scf.if %2 {
      %cst_10 = arith.constant 0.000000e+00 : f32
      %13 = vector.broadcast %cst_10 : f32 to vector<16x32xf32>
      %c0_11 = arith.constant 0 : index
      %c0_12 = arith.constant 0 : index
      %14 = vector.load %arg6[%c0_11, %c0_12] : memref<16x32xf32, #tpu.memory_space<vmem>>, vector<16x32xf32>
      tpu.vector_store %arg6[%c0_11, %c0_12], %13 {strides = array<i32>} : memref<16x32xf32, #tpu.memory_space<vmem>>, vector<16x32xf32>,
    } else {
    }
    %c0 = arith.constant 0 : index
    %c0_1 = arith.constant 0 : index
    %3 = vector.load %arg6[%c0, %c0_1] : memref<16x32xf32, #tpu.memory_space<vmem>>, vector<16x32xf32>
    %c0_2 = arith.constant 0 : index
    %c0_3 = arith.constant 0 : index
    %4 = vector.load %arg3[%c0_2, %c0_3] : memref<16x32xbf16, #tpu.memory_space<vmem>>, vector<16x32xbf16>
    %c0_4 = arith.constant 0 : index
    %c0_5 = arith.constant 0 : index
    %5 = vector.load %arg4[%c0_4, %c0_5] : memref<32x32xf32, #tpu.memory_space<vmem>>, vector<32x32xf32>
    %6 = arith.truncf %5 : vector<32x32xf32> to vector<32x32xbf16>
    %cst = arith.constant dense<0.000000e+00> : vector<16x32xf32>
    %7 = tpu.matmul %4, %6, %cst {dimension_numbers = #tpu.dot_dimension_numbers<[1], [1], [0], [0], [0, 0, 1, 0], [], []>} : vector<16x32xbf16>, vector<32x32xbf16>, vector<16x32xf32> -> vector<16x32xf32>
    %8 = arith.addf %3, %7 : vector<16x32xf32>
    %c0_6 = arith.constant 0 : index
    %c0_7 = arith.constant 0 : index
    %9 = vector.load %arg6[%c0_6, %c0_7] : memref<16x32xf32, #tpu.memory_space<vmem>>, vector<16x32xf32>
    tpu.vector_store %arg6[%c0_6, %c0_7], %8 {strides = array<i32>} : memref<16x32xf32, #tpu.memory_space<vmem>>, vector<16x32xf32>,
    %c0_i32_8 = arith.constant 0 : i32
    %10 = arith.cmpi eq, %arg2, %c0_i32_8 : i32
    %11 = arith.extui %10 : i1 to i32
    %c0_i32_9 = arith.constant 0 : i32
    %12 = arith.cmpi ne, %11, %c0_i32_9 : i32
    scf.if %12 {
      %c0_10 = arith.constant 0 : index
      %c0_11 = arith.constant 0 : index
      %13 = vector.load %arg6[%c0_10, %c0_11] : memref<16x32xf32, #tpu.memory_space<vmem>>, vector<16x32xf32>
      %c0_12 = arith.constant 0 : index
      %c0_13 = arith.constant 0 : index
      %14 = vector.load %arg5[%c0_12, %c0_13] : memref<1x32xf32, #tpu.memory_space<vmem>>, vector<1x32xf32>
      %15 = vector.broadcast %14 : vector<1x32xf32> to vector<16x32xf32>
      %16 = arith.addf %13, %15 : vector<16x32xf32>
      %c0_14 = arith.constant 0 : index
      %c0_15 = arith.constant 0 : index
      %17 = vector.load %arg6[%c0_14, %c0_15] : memref<16x32xf32, #tpu.memory_space<vmem>>, vector<16x32xf32>
      tpu.vector_store %arg6[%c0_14, %c0_15], %16 {strides = array<i32>} : memref<16x32xf32, #tpu.memory_space<vmem>>, vector<16x32xf32>,
    } else {
    }
    return
  }
  func.func @transform_0(%arg0: i32, %arg1: i32, %arg2: i32) -> (i32, i32) {
    %c0_i32 = arith.constant 0 : i32
    return %arg0, %arg2 : i32, i32
  }
  func.func @transform_1(%arg0: i32, %arg1: i32, %arg2: i32) -> (i32, i32) {
    %c0_i32 = arith.constant 0 : i32
    return %arg1, %arg2 : i32, i32
  }
  func.func @transform_2(%arg0: i32, %arg1: i32, %arg2: i32) -> (i32, i32) {
    %c0_i32 = arith.constant 0 : i32
    %c0_i32_0 = arith.constant 0 : i32
    return %c0_i32, %arg1 : i32, i32
  }
  func.func @transform_3(%arg0: i32, %arg1: i32, %arg2: i32) -> (i32, i32) {
    %c0_i32 = arith.constant 0 : i32
    return %arg0, %arg1 : i32, i32
  }
}

module attributes {stable_mosaic.version = 11 : i64} {
  func.func @qkv_proj_kernel(%arg0: i32, %arg1: i32, %arg2: i32, %arg3: memref<16x32xf32, #tpu.memory_space<vmem>>, %arg4: memref<16x32xf32, #tpu.memory_space<vmem>>, %arg5: memref<16x32xf32, #tpu.memory_space<vmem>>, %arg6: memref<32x32xf32, #tpu.memory_space<vmem>>, %arg7: memref<32x32xf32, #tpu.memory_space<vmem>>, %arg8: memref<32x32xf32, #tpu.memory_space<vmem>>, %arg9: memref<1x32xf32, #tpu.memory_space<vmem>>, %arg10: memref<1x32xf32, #tpu.memory_space<vmem>>, %arg11: memref<1x32xf32, #tpu.memory_space<vmem>>, %arg12: memref<16x32xbf16, #tpu.memory_space<vmem>>, %arg13: memref<16x32xbf16, #tpu.memory_space<vmem>>, %arg14: memref<16x32xbf16, #tpu.memory_space<vmem>>, %arg15: memref<3x16x32xf32, #tpu.memory_space<vmem>>) attributes {dimension_semantics = [#tpu.dimension_semantics<parallel>, #tpu.dimension_semantics<parallel>, #tpu.dimension_semantics<arbitrary>], iteration_bounds = array<i64: 1, 1, 1>, scalar_prefetch = 0 : i64, scratch_operands = 1 : i64, tpu.core_type = #tpu.core_type<tc>, window_params = [{transform_indices = @transform_0, window_bounds = array<i64: 16, 32>}, {transform_indices = @transform_1, window_bounds = array<i64: 16, 32>}, {transform_indices = @transform_2, window_bounds = array<i64: 16, 32>}, {transform_indices = @transform_3, window_bounds = array<i64: 32, 32>}, {transform_indices = @transform_4, window_bounds = array<i64: 32, 32>}, {transform_indices = @transform_5, window_bounds = array<i64: 32, 32>}, {transform_indices = @transform_6, window_bounds = array<i64: 1, 32>}, {transform_indices = @transform_7, window_bounds = array<i64: 1, 32>}, {transform_indices = @transform_8, window_bounds = array<i64: 1, 32>}, {transform_indices = @transform_9, window_bounds = array<i64: 16, 32>}, {transform_indices = @transform_10, window_bounds = array<i64: 16, 32>}, {transform_indices = @transform_11, window_bounds = array<i64: 16, 32>}]} {
    %c0_i32 = arith.constant 0 : i32
    %0 = arith.cmpi eq, %arg2, %c0_i32 : i32
    %1 = arith.extui %0 : i1 to i32
    %c0_i32_0 = arith.constant 0 : i32
    %2 = arith.cmpi ne, %1, %c0_i32_0 : i32
    scf.if %2 {
      %cst_32 = arith.constant 0.000000e+00 : f32
      %39 = vector.broadcast %cst_32 : f32 to vector<3x16x32xf32>
      %c0_33 = arith.constant 0 : index
      %c0_34 = arith.constant 0 : index
      %c0_35 = arith.constant 0 : index
      %40 = vector.load %arg15[%c0_33, %c0_34, %c0_35] : memref<3x16x32xf32, #tpu.memory_space<vmem>>, vector<3x16x32xf32>
      tpu.vector_store %arg15[%c0_33, %c0_34, %c0_35], %39 {strides = array<i32>} : memref<3x16x32xf32, #tpu.memory_space<vmem>>, vector<3x16x32xf32>,
    } else {
    }
    %c0 = arith.constant 0 : index
    %c0_1 = arith.constant 0 : index
    %3 = vector.load %arg3[%c0, %c0_1] : memref<16x32xf32, #tpu.memory_space<vmem>>, vector<16x32xf32>
    %4 = arith.truncf %3 : vector<16x32xf32> to vector<16x32xbf16>
    %c0_2 = arith.constant 0 : index
    %c0_3 = arith.constant 0 : index
    %5 = vector.load %arg4[%c0_2, %c0_3] : memref<16x32xf32, #tpu.memory_space<vmem>>, vector<16x32xf32>
    %6 = arith.truncf %5 : vector<16x32xf32> to vector<16x32xbf16>
    %c0_4 = arith.constant 0 : index
    %c0_5 = arith.constant 0 : index
    %7 = vector.load %arg5[%c0_4, %c0_5] : memref<16x32xf32, #tpu.memory_space<vmem>>, vector<16x32xf32>
    %8 = arith.truncf %7 : vector<16x32xf32> to vector<16x32xbf16>
    %c0_6 = arith.constant 0 : index
    %c0_7 = arith.constant 0 : index
    %c0_8 = arith.constant 0 : index
    %9 = vector.load %arg15[%c0_6, %c0_7, %c0_8] : memref<3x16x32xf32, #tpu.memory_space<vmem>>, vector<1x16x32xf32>
    %10 = vector.shape_cast %9 : vector<1x16x32xf32> to vector<16x32xf32>
    %c0_9 = arith.constant 0 : index
    %c0_10 = arith.constant 0 : index
    %11 = vector.load %arg6[%c0_9, %c0_10] : memref<32x32xf32, #tpu.memory_space<vmem>>, vector<32x32xf32>
    %12 = arith.truncf %11 : vector<32x32xf32> to vector<32x32xbf16>
    %cst = arith.constant dense<0.000000e+00> : vector<16x32xf32>
    %13 = tpu.matmul %4, %12, %cst {dimension_numbers = #tpu.dot_dimension_numbers<[1], [1], [0], [0], [0, 0, 1, 0], [], []>} : vector<16x32xbf16>, vector<32x32xbf16>, vector<16x32xf32> -> vector<16x32xf32>
    %14 = arith.addf %10, %13 : vector<16x32xf32>
    %c0_11 = arith.constant 0 : index
    %c0_12 = arith.constant 0 : index
    %c0_13 = arith.constant 0 : index
    %15 = vector.load %arg15[%c0_11, %c0_12, %c0_13] : memref<3x16x32xf32, #tpu.memory_space<vmem>>, vector<1x16x32xf32>
    %16 = vector.shape_cast %15 : vector<1x16x32xf32> to vector<16x32xf32>
    %17 = vector.shape_cast %14 : vector<16x32xf32> to vector<1x16x32xf32>
    tpu.vector_store %arg15[%c0_11, %c0_12, %c0_13], %17 {strides = array<i32>} : memref<3x16x32xf32, #tpu.memory_space<vmem>>, vector<1x16x32xf32>,
    %c1 = arith.constant 1 : index
    %c0_14 = arith.constant 0 : index
    %c0_15 = arith.constant 0 : index
    %18 = vector.load %arg15[%c1, %c0_14, %c0_15] : memref<3x16x32xf32, #tpu.memory_space<vmem>>, vector<1x16x32xf32>
    %19 = vector.shape_cast %18 : vector<1x16x32xf32> to vector<16x32xf32>
    %c0_16 = arith.constant 0 : index
    %c0_17 = arith.constant 0 : index
    %20 = vector.load %arg7[%c0_16, %c0_17] : memref<32x32xf32, #tpu.memory_space<vmem>>, vector<32x32xf32>
    %21 = arith.truncf %20 : vector<32x32xf32> to vector<32x32xbf16>
    %cst_18 = arith.constant dense<0.000000e+00> : vector<16x32xf32>
    %22 = tpu.matmul %6, %21, %cst_18 {dimension_numbers = #tpu.dot_dimension_numbers<[1], [1], [0], [0], [0, 0, 1, 0], [], []>} : vector<16x32xbf16>, vector<32x32xbf16>, vector<16x32xf32> -> vector<16x32xf32>
    %23 = arith.addf %19, %22 : vector<16x32xf32>
    %c1_19 = arith.constant 1 : index
    %c0_20 = arith.constant 0 : index
    %c0_21 = arith.constant 0 : index
    %24 = vector.load %arg15[%c1_19, %c0_20, %c0_21] : memref<3x16x32xf32, #tpu.memory_space<vmem>>, vector<1x16x32xf32>
    %25 = vector.shape_cast %24 : vector<1x16x32xf32> to vector<16x32xf32>
    %26 = vector.shape_cast %23 : vector<16x32xf32> to vector<1x16x32xf32>
    tpu.vector_store %arg15[%c1_19, %c0_20, %c0_21], %26 {strides = array<i32>} : memref<3x16x32xf32, #tpu.memory_space<vmem>>, vector<1x16x32xf32>,
    %c2 = arith.constant 2 : index
    %c0_22 = arith.constant 0 : index
    %c0_23 = arith.constant 0 : index
    %27 = vector.load %arg15[%c2, %c0_22, %c0_23] : memref<3x16x32xf32, #tpu.memory_space<vmem>>, vector<1x16x32xf32>
    %28 = vector.shape_cast %27 : vector<1x16x32xf32> to vector<16x32xf32>
    %c0_24 = arith.constant 0 : index
    %c0_25 = arith.constant 0 : index
    %29 = vector.load %arg8[%c0_24, %c0_25] : memref<32x32xf32, #tpu.memory_space<vmem>>, vector<32x32xf32>
    %30 = arith.truncf %29 : vector<32x32xf32> to vector<32x32xbf16>
    %cst_26 = arith.constant dense<0.000000e+00> : vector<16x32xf32>
    %31 = tpu.matmul %8, %30, %cst_26 {dimension_numbers = #tpu.dot_dimension_numbers<[1], [1], [0], [0], [0, 0, 1, 0], [], []>} : vector<16x32xbf16>, vector<32x32xbf16>, vector<16x32xf32> -> vector<16x32xf32>
    %32 = arith.addf %28, %31 : vector<16x32xf32>
    %c2_27 = arith.constant 2 : index
    %c0_28 = arith.constant 0 : index
    %c0_29 = arith.constant 0 : index
    %33 = vector.load %arg15[%c2_27, %c0_28, %c0_29] : memref<3x16x32xf32, #tpu.memory_space<vmem>>, vector<1x16x32xf32>
    %34 = vector.shape_cast %33 : vector<1x16x32xf32> to vector<16x32xf32>
    %35 = vector.shape_cast %32 : vector<16x32xf32> to vector<1x16x32xf32>
    tpu.vector_store %arg15[%c2_27, %c0_28, %c0_29], %35 {strides = array<i32>} : memref<3x16x32xf32, #tpu.memory_space<vmem>>, vector<1x16x32xf32>,
    %c0_i32_30 = arith.constant 0 : i32
    %36 = arith.cmpi eq, %arg2, %c0_i32_30 : i32
    %37 = arith.extui %36 : i1 to i32
    %c0_i32_31 = arith.constant 0 : i32
    %38 = arith.cmpi ne, %37, %c0_i32_31 : i32
    scf.if %38 {
      %c0_32 = arith.constant 0 : index
      %c0_33 = arith.constant 0 : index
      %c0_34 = arith.constant 0 : index
      %39 = vector.load %arg15[%c0_32, %c0_33, %c0_34] : memref<3x16x32xf32, #tpu.memory_space<vmem>>, vector<1x16x32xf32>
      %40 = vector.shape_cast %39 : vector<1x16x32xf32> to vector<16x32xf32>
      %c0_35 = arith.constant 0 : index
      %c0_36 = arith.constant 0 : index
      %41 = vector.load %arg9[%c0_35, %c0_36] : memref<1x32xf32, #tpu.memory_space<vmem>>, vector<1x32xf32>
      %42 = vector.broadcast %41 : vector<1x32xf32> to vector<16x32xf32>
      %43 = arith.addf %40, %42 : vector<16x32xf32>
      %cst_37 = arith.constant 0.353553385 : f32
      %44 = vector.broadcast %cst_37 : f32 to vector<16x32xf32>
      %45 = arith.mulf %43, %44 : vector<16x32xf32>
      %46 = arith.truncf %45 : vector<16x32xf32> to vector<16x32xbf16>
      %c0_38 = arith.constant 0 : index
      %c0_39 = arith.constant 0 : index
      %47 = vector.load %arg12[%c0_38, %c0_39] : memref<16x32xbf16, #tpu.memory_space<vmem>>, vector<16x32xbf16>
      tpu.vector_store %arg12[%c0_38, %c0_39], %46 {strides = array<i32>} : memref<16x32xbf16, #tpu.memory_space<vmem>>, vector<16x32xbf16>,
      %c1_40 = arith.constant 1 : index
      %c0_41 = arith.constant 0 : index
      %c0_42 = arith.constant 0 : index
      %48 = vector.load %arg15[%c1_40, %c0_41, %c0_42] : memref<3x16x32xf32, #tpu.memory_space<vmem>>, vector<1x16x32xf32>
      %49 = vector.shape_cast %48 : vector<1x16x32xf32> to vector<16x32xf32>
      %c0_43 = arith.constant 0 : index
      %c0_44 = arith.constant 0 : index
      %50 = vector.load %arg10[%c0_43, %c0_44] : memref<1x32xf32, #tpu.memory_space<vmem>>, vector<1x32xf32>
      %51 = vector.broadcast %50 : vector<1x32xf32> to vector<16x32xf32>
      %52 = arith.addf %49, %51 : vector<16x32xf32>
      %53 = arith.truncf %52 : vector<16x32xf32> to vector<16x32xbf16>
      %c0_45 = arith.constant 0 : index
      %c0_46 = arith.constant 0 : index
      %54 = vector.load %arg13[%c0_45, %c0_46] : memref<16x32xbf16, #tpu.memory_space<vmem>>, vector<16x32xbf16>
      tpu.vector_store %arg13[%c0_45, %c0_46], %53 {strides = array<i32>} : memref<16x32xbf16, #tpu.memory_space<vmem>>, vector<16x32xbf16>,
      %c2_47 = arith.constant 2 : index
      %c0_48 = arith.constant 0 : index
      %c0_49 = arith.constant 0 : index
      %55 = vector.load %arg15[%c2_47, %c0_48, %c0_49] : memref<3x16x32xf32, #tpu.memory_space<vmem>>, vector<1x16x32xf32>
      %56 = vector.shape_cast %55 : vector<1x16x32xf32> to vector<16x32xf32>
      %c0_50 = arith.constant 0 : index
      %c0_51 = arith.constant 0 : index
      %57 = vector.load %arg11[%c0_50, %c0_51] : memref<1x32xf32, #tpu.memory_space<vmem>>, vector<1x32xf32>
      %58 = vector.broadcast %57 : vector<1x32xf32> to vector<16x32xf32>
      %59 = arith.addf %56, %58 : vector<16x32xf32>
      %60 = arith.truncf %59 : vector<16x32xf32> to vector<16x32xbf16>
      %c0_52 = arith.constant 0 : index
      %c0_53 = arith.constant 0 : index
      %61 = vector.load %arg14[%c0_52, %c0_53] : memref<16x32xbf16, #tpu.memory_space<vmem>>, vector<16x32xbf16>
      tpu.vector_store %arg14[%c0_52, %c0_53], %60 {strides = array<i32>} : memref<16x32xbf16, #tpu.memory_space<vmem>>, vector<16x32xbf16>,
    } else {
    }
    return
  }
  func.func @transform_0(%arg0: i32, %arg1: i32, %arg2: i32) -> (i32, i32) {
    %c0_i32 = arith.constant 0 : i32
    return %arg0, %arg2 : i32, i32
  }
  func.func @transform_1(%arg0: i32, %arg1: i32, %arg2: i32) -> (i32, i32) {
    %c0_i32 = arith.constant 0 : i32
    return %arg0, %arg2 : i32, i32
  }
  func.func @transform_2(%arg0: i32, %arg1: i32, %arg2: i32) -> (i32, i32) {
    %c0_i32 = arith.constant 0 : i32
    return %arg0, %arg2 : i32, i32
  }
  func.func @transform_3(%arg0: i32, %arg1: i32, %arg2: i32) -> (i32, i32) {
    %c0_i32 = arith.constant 0 : i32
    return %arg1, %arg2 : i32, i32
  }
  func.func @transform_4(%arg0: i32, %arg1: i32, %arg2: i32) -> (i32, i32) {
    %c0_i32 = arith.constant 0 : i32
    return %arg1, %arg2 : i32, i32
  }
  func.func @transform_5(%arg0: i32, %arg1: i32, %arg2: i32) -> (i32, i32) {
    %c0_i32 = arith.constant 0 : i32
    return %arg1, %arg2 : i32, i32
  }
  func.func @transform_6(%arg0: i32, %arg1: i32, %arg2: i32) -> (i32, i32) {
    %c0_i32 = arith.constant 0 : i32
    %c0_i32_0 = arith.constant 0 : i32
    return %c0_i32, %arg1 : i32, i32
  }
  func.func @transform_7(%arg0: i32, %arg1: i32, %arg2: i32) -> (i32, i32) {
    %c0_i32 = arith.constant 0 : i32
    %c0_i32_0 = arith.constant 0 : i32
    return %c0_i32, %arg1 : i32, i32
  }
  func.func @transform_8(%arg0: i32, %arg1: i32, %arg2: i32) -> (i32, i32) {
    %c0_i32 = arith.constant 0 : i32
    %c0_i32_0 = arith.constant 0 : i32
    return %c0_i32, %arg1 : i32, i32
  }
  func.func @transform_9(%arg0: i32, %arg1: i32, %arg2: i32) -> (i32, i32) {
    %c0_i32 = arith.constant 0 : i32
    return %arg0, %arg1 : i32, i32
  }
  func.func @transform_10(%arg0: i32, %arg1: i32, %arg2: i32) -> (i32, i32) {
    %c0_i32 = arith.constant 0 : i32
    return %arg0, %arg1 : i32, i32
  }
  func.func @transform_11(%arg0: i32, %arg1: i32, %arg2: i32) -> (i32, i32) {
    %c0_i32 = arith.constant 0 : i32
    return %arg0, %arg1 : i32, i32
  }
}

module attributes {stable_mosaic.version = 11 : i64} {
  func.func @attn_kernel(%arg0: i32, %arg1: i32, %arg2: i32, %arg3: memref<1x8x32xbf16, #tpu.memory_space<vmem>>, %arg4: memref<1x8x32xbf16, #tpu.memory_space<vmem>>, %arg5: memref<1x8x32xbf16, #tpu.memory_space<vmem>>, %arg6: memref<1x8x8xi8, #tpu.memory_space<vmem>>, %arg7: memref<1x8x32xbf16, #tpu.memory_space<vmem>>, %arg8: memref<8x32xf32, #tpu.memory_space<vmem>>, %arg9: memref<8x4xf32, #tpu.memory_space<vmem>>, %arg10: memref<8x4xf32, #tpu.memory_space<vmem>>) attributes {dimension_semantics = [#tpu.dimension_semantics<parallel>, #tpu.dimension_semantics<parallel>, #tpu.dimension_semantics<arbitrary>], iteration_bounds = array<i64: 2, 1, 1>, scalar_prefetch = 0 : i64, scratch_operands = 3 : i64, tpu.core_type = #tpu.core_type<tc>, window_params = [{transform_indices = @transform_0, window_bounds = array<i64: 1, 8, 32>}, {transform_indices = @transform_1, window_bounds = array<i64: 1, 8, 32>}, {transform_indices = @transform_2, window_bounds = array<i64: 1, 8, 32>}, {transform_indices = @transform_3, window_bounds = array<i64: 1, 8, 8>}, {transform_indices = @transform_4, window_bounds = array<i64: 1, 8, 32>}]} {
    %c0_i32 = arith.constant 0 : i32
    %0 = arith.cmpi eq, %arg2, %c0_i32 : i32
    %1 = arith.extui %0 : i1 to i32
    %c0_i32_0 = arith.constant 0 : i32
    %2 = arith.cmpi ne, %1, %c0_i32_0 : i32
    scf.if %2 {
      %cst_75 = arith.constant 0.000000e+00 : f32
      %132 = vector.broadcast %cst_75 : f32 to vector<8x32xf32>
      %c0_76 = arith.constant 0 : index
      %c0_77 = arith.constant 0 : index
      %133 = vector.load %arg8[%c0_76, %c0_77] : memref<8x32xf32, #tpu.memory_space<vmem>>, vector<8x32xf32>
      tpu.vector_store %arg8[%c0_76, %c0_77], %132 {strides = array<i32>} : memref<8x32xf32, #tpu.memory_space<vmem>>, vector<8x32xf32>,
      %cst_78 = arith.constant -1.000000e+30 : f32
      %134 = vector.broadcast %cst_78 : f32 to vector<8x4xf32>
      %c0_79 = arith.constant 0 : index
      %c0_80 = arith.constant 0 : index
      %135 = vector.load %arg9[%c0_79, %c0_80] : memref<8x4xf32, #tpu.memory_space<vmem>>, vector<8x4xf32>
      tpu.vector_store %arg9[%c0_79, %c0_80], %134 {strides = array<i32>} : memref<8x4xf32, #tpu.memory_space<vmem>>, vector<8x4xf32>,
      %cst_81 = arith.constant 0.000000e+00 : f32
      %136 = vector.broadcast %cst_81 : f32 to vector<8x4xf32>
      %c0_82 = arith.constant 0 : index
      %c0_83 = arith.constant 0 : index
      %137 = vector.load %arg10[%c0_82, %c0_83] : memref<8x4xf32, #tpu.memory_space<vmem>>, vector<8x4xf32>
      tpu.vector_store %arg10[%c0_82, %c0_83], %136 {strides = array<i32>} : memref<8x4xf32, #tpu.memory_space<vmem>>, vector<8x4xf32>,
    } else {
    }
    %c0 = arith.constant 0 : index
    %c0_1 = arith.constant 0 : index
    %c0_2 = arith.constant 0 : index
    %3 = vector.load %arg3[%c0, %c0_1, %c0_2] : memref<1x8x32xbf16, #tpu.memory_space<vmem>>, vector<1x8x32xbf16>
    %4 = vector.shape_cast %3 : vector<1x8x32xbf16> to vector<8x32xbf16>
    %c0_3 = arith.constant 0 : index
    %c0_4 = arith.constant 0 : index
    %c0_5 = arith.constant 0 : index
    %5 = vector.load %arg4[%c0_3, %c0_4, %c0_5] : memref<1x8x32xbf16, #tpu.memory_space<vmem>>, vector<1x8x32xbf16>
    %6 = vector.shape_cast %5 : vector<1x8x32xbf16> to vector<8x32xbf16>
    %c0_6 = arith.constant 0 : index
    %c0_7 = arith.constant 0 : index
    %c0_8 = arith.constant 0 : index
    %7 = vector.load %arg5[%c0_6, %c0_7, %c0_8] : memref<1x8x32xbf16, #tpu.memory_space<vmem>>, vector<1x8x32xbf16>
    %8 = vector.shape_cast %7 : vector<1x8x32xbf16> to vector<8x32xbf16>
    %c0_9 = arith.constant 0 : index
    %c0_10 = arith.constant 0 : index
    %c0_11 = arith.constant 0 : index
    %9 = vector.load %arg6[%c0_9, %c0_10, %c0_11] : memref<1x8x8xi8, #tpu.memory_space<vmem>>, vector<1x8x8xi8>
    %10 = vector.shape_cast %9 : vector<1x8x8xi8> to vector<8x8xi8>
    %c0_i8 = arith.constant 0 : i8
    %11 = vector.broadcast %c0_i8 : i8 to vector<8x8xi8>
    %12 = arith.cmpi ne, %10, %11 : vector<8x8xi8>
    %13 = vector.extract_strided_slice %4 {offsets = [0, 0], sizes = [8, 8], strides = [1, 1]} : vector<8x32xbf16> to vector<8x8xbf16>
    %14 = vector.extract_strided_slice %6 {offsets = [0, 0], sizes = [8, 8], strides = [1, 1]} : vector<8x32xbf16> to vector<8x8xbf16>
    %cst = arith.constant dense<0.000000e+00> : vector<8x8xf32>
    %15 = tpu.matmul %13, %14, %cst {dimension_numbers = #tpu.dot_dimension_numbers<[1], [1], [0], [0], [0, 0, 1, 0], [], []>} : vector<8x8xbf16>, vector<8x8xbf16>, vector<8x8xf32> -> vector<8x8xf32>
    %cst_12 = arith.constant -1.000000e+09 : f32
    %16 = vector.broadcast %cst_12 : f32 to vector<8x8xf32>
    %17 = arith.select %12, %16, %15 : vector<8x8xi1>, vector<8x8xf32>
    %c0_13 = arith.constant 0 : index
    %c0_14 = arith.constant 0 : index
    %18 = vector.load %arg9[%c0_13, %c0_14] : memref<8x4xf32, #tpu.memory_space<vmem>>, vector<8x1xf32>
    %cst_15 = arith.constant dense<0xFF800000> : vector<8xf32>
    %19 = vector.multi_reduction <maximumf>, %17, %cst_15 [1] : vector<8x8xf32> to vector<8xf32>
    %20 = vector.shape_cast %19 : vector<8xf32> to vector<8x1xf32>
    %21 = arith.maximumf %18, %20 : vector<8x1xf32>
    %22 = arith.subf %18, %21 : vector<8x1xf32>
    %23 = math.exp %22 : vector<8x1xf32>
    %24 = vector.broadcast %21 : vector<8x1xf32> to vector<8x8xf32>
    %25 = arith.subf %17, %24 : vector<8x8xf32>
    %26 = math.exp %25 : vector<8x8xf32>
    %c0_16 = arith.constant 0 : index
    %c0_17 = arith.constant 0 : index
    %27 = vector.load %arg10[%c0_16, %c0_17] : memref<8x4xf32, #tpu.memory_space<vmem>>, vector<8x1xf32>
    %28 = arith.mulf %23, %27 : vector<8x1xf32>
    %cst_18 = arith.constant dense<0.000000e+00> : vector<8xf32>
    %29 = vector.multi_reduction <add>, %26, %cst_18 [1] : vector<8x8xf32> to vector<8xf32>
    %30 = vector.shape_cast %29 : vector<8xf32> to vector<8x1xf32>
    %31 = arith.addf %28, %30 : vector<8x1xf32>
    %c0_19 = arith.constant 0 : index
    %c0_20 = arith.constant 0 : index
    %32 = vector.load %arg10[%c0_19, %c0_20] : memref<8x4xf32, #tpu.memory_space<vmem>>, vector<8x1xf32>
    tpu.vector_store %arg10[%c0_19, %c0_20], %31 {strides = array<i32>} : memref<8x4xf32, #tpu.memory_space<vmem>>, vector<8x1xf32>,
    %c0_21 = arith.constant 0 : index
    %c0_22 = arith.constant 0 : index
    %33 = vector.load %arg8[%c0_21, %c0_22] : memref<8x32xf32, #tpu.memory_space<vmem>>, vector<8x8xf32>
    %34 = vector.broadcast %23 : vector<8x1xf32> to vector<8x8xf32>
    %35 = arith.mulf %34, %33 : vector<8x8xf32>
    %36 = arith.truncf %26 : vector<8x8xf32> to vector<8x8xbf16>
    %37 = vector.extract_strided_slice %8 {offsets = [0, 0], sizes = [8, 8], strides = [1, 1]} : vector<8x32xbf16> to vector<8x8xbf16>
    %cst_23 = arith.constant dense<0.000000e+00> : vector<8x8xf32>
    %38 = tpu.matmul %36, %37, %cst_23 {dimension_numbers = #tpu.dot_dimension_numbers<[1], [0], [0], [1], [0, 0, 1, 1], [], []>} : vector<8x8xbf16>, vector<8x8xbf16>, vector<8x8xf32> -> vector<8x8xf32>
    %39 = arith.addf %35, %38 : vector<8x8xf32>
    %c0_24 = arith.constant 0 : index
    %c0_25 = arith.constant 0 : index
    %40 = vector.load %arg8[%c0_24, %c0_25] : memref<8x32xf32, #tpu.memory_space<vmem>>, vector<8x8xf32>
    tpu.vector_store %arg8[%c0_24, %c0_25], %39 {strides = array<i32>} : memref<8x32xf32, #tpu.memory_space<vmem>>, vector<8x8xf32>,
    %c0_26 = arith.constant 0 : index
    %c0_27 = arith.constant 0 : index
    %41 = vector.load %arg9[%c0_26, %c0_27] : memref<8x4xf32, #tpu.memory_space<vmem>>, vector<8x1xf32>
    tpu.vector_store %arg9[%c0_26, %c0_27], %21 {strides = array<i32>} : memref<8x4xf32, #tpu.memory_space<vmem>>, vector<8x1xf32>,
    %42 = vector.extract_strided_slice %4 {offsets = [0, 8], sizes = [8, 8], strides = [1, 1]} : vector<8x32xbf16> to vector<8x8xbf16>
    %43 = vector.extract_strided_slice %6 {offsets = [0, 8], sizes = [8, 8], strides = [1, 1]} : vector<8x32xbf16> to vector<8x8xbf16>
    %cst_28 = arith.constant dense<0.000000e+00> : vector<8x8xf32>
    %44 = tpu.matmul %42, %43, %cst_28 {dimension_numbers = #tpu.dot_dimension_numbers<[1], [1], [0], [0], [0, 0, 1, 0], [], []>} : vector<8x8xbf16>, vector<8x8xbf16>, vector<8x8xf32> -> vector<8x8xf32>
    %cst_29 = arith.constant -1.000000e+09 : f32
    %45 = vector.broadcast %cst_29 : f32 to vector<8x8xf32>
    %46 = arith.select %12, %45, %44 : vector<8x8xi1>, vector<8x8xf32>
    %c0_30 = arith.constant 0 : index
    %c1 = arith.constant 1 : index
    %47 = vector.load %arg9[%c0_30, %c1] : memref<8x4xf32, #tpu.memory_space<vmem>>, vector<8x1xf32>
    %cst_31 = arith.constant dense<0xFF800000> : vector<8xf32>
    %48 = vector.multi_reduction <maximumf>, %46, %cst_31 [1] : vector<8x8xf32> to vector<8xf32>
    %49 = vector.shape_cast %48 : vector<8xf32> to vector<8x1xf32>
    %50 = arith.maximumf %47, %49 : vector<8x1xf32>
    %51 = arith.subf %47, %50 : vector<8x1xf32>
    %52 = math.exp %51 : vector<8x1xf32>
    %53 = vector.broadcast %50 : vector<8x1xf32> to vector<8x8xf32>
    %54 = arith.subf %46, %53 : vector<8x8xf32>
    %55 = math.exp %54 : vector<8x8xf32>
    %c0_32 = arith.constant 0 : index
    %c1_33 = arith.constant 1 : index
    %56 = vector.load %arg10[%c0_32, %c1_33] : memref<8x4xf32, #tpu.memory_space<vmem>>, vector<8x1xf32>
    %57 = arith.mulf %52, %56 : vector<8x1xf32>
    %cst_34 = arith.constant dense<0.000000e+00> : vector<8xf32>
    %58 = vector.multi_reduction <add>, %55, %cst_34 [1] : vector<8x8xf32> to vector<8xf32>
    %59 = vector.shape_cast %58 : vector<8xf32> to vector<8x1xf32>
    %60 = arith.addf %57, %59 : vector<8x1xf32>
    %c0_35 = arith.constant 0 : index
    %c1_36 = arith.constant 1 : index
    %61 = vector.load %arg10[%c0_35, %c1_36] : memref<8x4xf32, #tpu.memory_space<vmem>>, vector<8x1xf32>
    tpu.vector_store %arg10[%c0_35, %c1_36], %60 {strides = array<i32>} : memref<8x4xf32, #tpu.memory_space<vmem>>, vector<8x1xf32>,
    %c0_37 = arith.constant 0 : index
    %c8 = arith.constant 8 : index
    %62 = vector.load %arg8[%c0_37, %c8] : memref<8x32xf32, #tpu.memory_space<vmem>>, vector<8x8xf32>
    %63 = vector.broadcast %52 : vector<8x1xf32> to vector<8x8xf32>
    %64 = arith.mulf %63, %62 : vector<8x8xf32>
    %65 = arith.truncf %55 : vector<8x8xf32> to vector<8x8xbf16>
    %66 = vector.extract_strided_slice %8 {offsets = [0, 8], sizes = [8, 8], strides = [1, 1]} : vector<8x32xbf16> to vector<8x8xbf16>
    %cst_38 = arith.constant dense<0.000000e+00> : vector<8x8xf32>
    %67 = tpu.matmul %65, %66, %cst_38 {dimension_numbers = #tpu.dot_dimension_numbers<[1], [0], [0], [1], [0, 0, 1, 1], [], []>} : vector<8x8xbf16>, vector<8x8xbf16>, vector<8x8xf32> -> vector<8x8xf32>
    %68 = arith.addf %64, %67 : vector<8x8xf32>
    %c0_39 = arith.constant 0 : index
    %c8_40 = arith.constant 8 : index
    %69 = vector.load %arg8[%c0_39, %c8_40] : memref<8x32xf32, #tpu.memory_space<vmem>>, vector<8x8xf32>
    tpu.vector_store %arg8[%c0_39, %c8_40], %68 {strides = array<i32>} : memref<8x32xf32, #tpu.memory_space<vmem>>, vector<8x8xf32>,
    %c0_41 = arith.constant 0 : index
    %c1_42 = arith.constant 1 : index
    %70 = vector.load %arg9[%c0_41, %c1_42] : memref<8x4xf32, #tpu.memory_space<vmem>>, vector<8x1xf32>
    tpu.vector_store %arg9[%c0_41, %c1_42], %50 {strides = array<i32>} : memref<8x4xf32, #tpu.memory_space<vmem>>, vector<8x1xf32>,
    %71 = vector.extract_strided_slice %4 {offsets = [0, 16], sizes = [8, 8], strides = [1, 1]} : vector<8x32xbf16> to vector<8x8xbf16>
    %72 = vector.extract_strided_slice %6 {offsets = [0, 16], sizes = [8, 8], strides = [1, 1]} : vector<8x32xbf16> to vector<8x8xbf16>
    %cst_43 = arith.constant dense<0.000000e+00> : vector<8x8xf32>
    %73 = tpu.matmul %71, %72, %cst_43 {dimension_numbers = #tpu.dot_dimension_numbers<[1], [1], [0], [0], [0, 0, 1, 0], [], []>} : vector<8x8xbf16>, vector<8x8xbf16>, vector<8x8xf32> -> vector<8x8xf32>
    %cst_44 = arith.constant -1.000000e+09 : f32
    %74 = vector.broadcast %cst_44 : f32 to vector<8x8xf32>
    %75 = arith.select %12, %74, %73 : vector<8x8xi1>, vector<8x8xf32>
    %c0_45 = arith.constant 0 : index
    %c2 = arith.constant 2 : index
    %76 = vector.load %arg9[%c0_45, %c2] : memref<8x4xf32, #tpu.memory_space<vmem>>, vector<8x1xf32>
    %cst_46 = arith.constant dense<0xFF800000> : vector<8xf32>
    %77 = vector.multi_reduction <maximumf>, %75, %cst_46 [1] : vector<8x8xf32> to vector<8xf32>
    %78 = vector.shape_cast %77 : vector<8xf32> to vector<8x1xf32>
    %79 = arith.maximumf %76, %78 : vector<8x1xf32>
    %80 = arith.subf %76, %79 : vector<8x1xf32>
    %81 = math.exp %80 : vector<8x1xf32>
    %82 = vector.broadcast %79 : vector<8x1xf32> to vector<8x8xf32>
    %83 = arith.subf %75, %82 : vector<8x8xf32>
    %84 = math.exp %83 : vector<8x8xf32>
    %c0_47 = arith.constant 0 : index
    %c2_48 = arith.constant 2 : index
    %85 = vector.load %arg10[%c0_47, %c2_48] : memref<8x4xf32, #tpu.memory_space<vmem>>, vector<8x1xf32>
    %86 = arith.mulf %81, %85 : vector<8x1xf32>
    %cst_49 = arith.constant dense<0.000000e+00> : vector<8xf32>
    %87 = vector.multi_reduction <add>, %84, %cst_49 [1] : vector<8x8xf32> to vector<8xf32>
    %88 = vector.shape_cast %87 : vector<8xf32> to vector<8x1xf32>
    %89 = arith.addf %86, %88 : vector<8x1xf32>
    %c0_50 = arith.constant 0 : index
    %c2_51 = arith.constant 2 : index
    %90 = vector.load %arg10[%c0_50, %c2_51] : memref<8x4xf32, #tpu.memory_space<vmem>>, vector<8x1xf32>
    tpu.vector_store %arg10[%c0_50, %c2_51], %89 {strides = array<i32>} : memref<8x4xf32, #tpu.memory_space<vmem>>, vector<8x1xf32>,
    %c0_52 = arith.constant 0 : index
    %c16 = arith.constant 16 : index
    %91 = vector.load %arg8[%c0_52, %c16] : memref<8x32xf32, #tpu.memory_space<vmem>>, vector<8x8xf32>
    %92 = vector.broadcast %81 : vector<8x1xf32> to vector<8x8xf32>
    %93 = arith.mulf %92, %91 : vector<8x8xf32>
    %94 = arith.truncf %84 : vector<8x8xf32> to vector<8x8xbf16>
    %95 = vector.extract_strided_slice %8 {offsets = [0, 16], sizes = [8, 8], strides = [1, 1]} : vector<8x32xbf16> to vector<8x8xbf16>
    %cst_53 = arith.constant dense<0.000000e+00> : vector<8x8xf32>
    %96 = tpu.matmul %94, %95, %cst_53 {dimension_numbers = #tpu.dot_dimension_numbers<[1], [0], [0], [1], [0, 0, 1, 1], [], []>} : vector<8x8xbf16>, vector<8x8xbf16>, vector<8x8xf32> -> vector<8x8xf32>
    %97 = arith.addf %93, %96 : vector<8x8xf32>
    %c0_54 = arith.constant 0 : index
    %c16_55 = arith.constant 16 : index
    %98 = vector.load %arg8[%c0_54, %c16_55] : memref<8x32xf32, #tpu.memory_space<vmem>>, vector<8x8xf32>
    tpu.vector_store %arg8[%c0_54, %c16_55], %97 {strides = array<i32>} : memref<8x32xf32, #tpu.memory_space<vmem>>, vector<8x8xf32>,
    %c0_56 = arith.constant 0 : index
    %c2_57 = arith.constant 2 : index
    %99 = vector.load %arg9[%c0_56, %c2_57] : memref<8x4xf32, #tpu.memory_space<vmem>>, vector<8x1xf32>
    tpu.vector_store %arg9[%c0_56, %c2_57], %79 {strides = array<i32>} : memref<8x4xf32, #tpu.memory_space<vmem>>, vector<8x1xf32>,
    %100 = vector.extract_strided_slice %4 {offsets = [0, 24], sizes = [8, 8], strides = [1, 1]} : vector<8x32xbf16> to vector<8x8xbf16>
    %101 = vector.extract_strided_slice %6 {offsets = [0, 24], sizes = [8, 8], strides = [1, 1]} : vector<8x32xbf16> to vector<8x8xbf16>
    %cst_58 = arith.constant dense<0.000000e+00> : vector<8x8xf32>
    %102 = tpu.matmul %100, %101, %cst_58 {dimension_numbers = #tpu.dot_dimension_numbers<[1], [1], [0], [0], [0, 0, 1, 0], [], []>} : vector<8x8xbf16>, vector<8x8xbf16>, vector<8x8xf32> -> vector<8x8xf32>
    %cst_59 = arith.constant -1.000000e+09 : f32
    %103 = vector.broadcast %cst_59 : f32 to vector<8x8xf32>
    %104 = arith.select %12, %103, %102 : vector<8x8xi1>, vector<8x8xf32>
    %c0_60 = arith.constant 0 : index
    %c3 = arith.constant 3 : index
    %105 = vector.load %arg9[%c0_60, %c3] : memref<8x4xf32, #tpu.memory_space<vmem>>, vector<8x1xf32>
    %cst_61 = arith.constant dense<0xFF800000> : vector<8xf32>
    %106 = vector.multi_reduction <maximumf>, %104, %cst_61 [1] : vector<8x8xf32> to vector<8xf32>
    %107 = vector.shape_cast %106 : vector<8xf32> to vector<8x1xf32>
    %108 = arith.maximumf %105, %107 : vector<8x1xf32>
    %109 = arith.subf %105, %108 : vector<8x1xf32>
    %110 = math.exp %109 : vector<8x1xf32>
    %111 = vector.broadcast %108 : vector<8x1xf32> to vector<8x8xf32>
    %112 = arith.subf %104, %111 : vector<8x8xf32>
    %113 = math.exp %112 : vector<8x8xf32>
    %c0_62 = arith.constant 0 : index
    %c3_63 = arith.constant 3 : index
    %114 = vector.load %arg10[%c0_62, %c3_63] : memref<8x4xf32, #tpu.memory_space<vmem>>, vector<8x1xf32>
    %115 = arith.mulf %110, %114 : vector<8x1xf32>
    %cst_64 = arith.constant dense<0.000000e+00> : vector<8xf32>
    %116 = vector.multi_reduction <add>, %113, %cst_64 [1] : vector<8x8xf32> to vector<8xf32>
    %117 = vector.shape_cast %116 : vector<8xf32> to vector<8x1xf32>
    %118 = arith.addf %115, %117 : vector<8x1xf32>
    %c0_65 = arith.constant 0 : index
    %c3_66 = arith.constant 3 : index
    %119 = vector.load %arg10[%c0_65, %c3_66] : memref<8x4xf32, #tpu.memory_space<vmem>>, vector<8x1xf32>
    tpu.vector_store %arg10[%c0_65, %c3_66], %118 {strides = array<i32>} : memref<8x4xf32, #tpu.memory_space<vmem>>, vector<8x1xf32>,
    %c0_67 = arith.constant 0 : index
    %c24 = arith.constant 24 : index
    %120 = vector.load %arg8[%c0_67, %c24] : memref<8x32xf32, #tpu.memory_space<vmem>>, vector<8x8xf32>
    %121 = vector.broadcast %110 : vector<8x1xf32> to vector<8x8xf32>
    %122 = arith.mulf %121, %120 : vector<8x8xf32>
    %123 = arith.truncf %113 : vector<8x8xf32> to vector<8x8xbf16>
    %124 = vector.extract_strided_slice %8 {offsets = [0, 24], sizes = [8, 8], strides = [1, 1]} : vector<8x32xbf16> to vector<8x8xbf16>
    %cst_68 = arith.constant dense<0.000000e+00> : vector<8x8xf32>
    %125 = tpu.matmul %123, %124, %cst_68 {dimension_numbers = #tpu.dot_dimension_numbers<[1], [0], [0], [1], [0, 0, 1, 1], [], []>} : vector<8x8xbf16>, vector<8x8xbf16>, vector<8x8xf32> -> vector<8x8xf32>
    %126 = arith.addf %122, %125 : vector<8x8xf32>
    %c0_69 = arith.constant 0 : index
    %c24_70 = arith.constant 24 : index
    %127 = vector.load %arg8[%c0_69, %c24_70] : memref<8x32xf32, #tpu.memory_space<vmem>>, vector<8x8xf32>
    tpu.vector_store %arg8[%c0_69, %c24_70], %126 {strides = array<i32>} : memref<8x32xf32, #tpu.memory_space<vmem>>, vector<8x8xf32>,
    %c0_71 = arith.constant 0 : index
    %c3_72 = arith.constant 3 : index
    %128 = vector.load %arg9[%c0_71, %c3_72] : memref<8x4xf32, #tpu.memory_space<vmem>>, vector<8x1xf32>
    tpu.vector_store %arg9[%c0_71, %c3_72], %108 {strides = array<i32>} : memref<8x4xf32, #tpu.memory_space<vmem>>, vector<8x1xf32>,
    %c0_i32_73 = arith.constant 0 : i32
    %129 = arith.cmpi eq, %arg2, %c0_i32_73 : i32
    %130 = arith.extui %129 : i1 to i32
    %c0_i32_74 = arith.constant 0 : i32
    %131 = arith.cmpi ne, %130, %c0_i32_74 : i32
    scf.if %131 {
      %c0_75 = arith.constant 0 : index
      %c0_76 = arith.constant 0 : index
      %132 = vector.load %arg10[%c0_75, %c0_76] : memref<8x4xf32, #tpu.memory_space<vmem>>, vector<8x1xf32>
      %133 = tpu.reciprocal %132 {approx = true} : vector<8x1xf32> -> vector<8x1xf32>
      %c0_77 = arith.constant 0 : index
      %c0_78 = arith.constant 0 : index
      %134 = vector.load %arg8[%c0_77, %c0_78] : memref<8x32xf32, #tpu.memory_space<vmem>>, vector<8x8xf32>
      %135 = vector.broadcast %133 : vector<8x1xf32> to vector<8x8xf32>
      %136 = arith.mulf %134, %135 : vector<8x8xf32>
      %c0_79 = arith.constant 0 : index
      %c1_80 = arith.constant 1 : index
      %137 = vector.load %arg10[%c0_79, %c1_80] : memref<8x4xf32, #tpu.memory_space<vmem>>, vector<8x1xf32>
      %138 = tpu.reciprocal %137 {approx = true} : vector<8x1xf32> -> vector<8x1xf32>
      %c0_81 = arith.constant 0 : index
      %c8_82 = arith.constant 8 : index
      %139 = vector.load %arg8[%c0_81, %c8_82] : memref<8x32xf32, #tpu.memory_space<vmem>>, vector<8x8xf32>
      %140 = vector.broadcast %138 : vector<8x1xf32> to vector<8x8xf32>
      %141 = arith.mulf %139, %140 : vector<8x8xf32>
      %c0_83 = arith.constant 0 : index
      %c2_84 = arith.constant 2 : index
      %142 = vector.load %arg10[%c0_83, %c2_84] : memref<8x4xf32, #tpu.memory_space<vmem>>, vector<8x1xf32>
      %143 = tpu.reciprocal %142 {approx = true} : vector<8x1xf32> -> vector<8x1xf32>
      %c0_85 = arith.constant 0 : index
      %c16_86 = arith.constant 16 : index
      %144 = vector.load %arg8[%c0_85, %c16_86] : memref<8x32xf32, #tpu.memory_space<vmem>>, vector<8x8xf32>
      %145 = vector.broadcast %143 : vector<8x1xf32> to vector<8x8xf32>
      %146 = arith.mulf %144, %145 : vector<8x8xf32>
      %c0_87 = arith.constant 0 : index
      %c3_88 = arith.constant 3 : index
      %147 = vector.load %arg10[%c0_87, %c3_88] : memref<8x4xf32, #tpu.memory_space<vmem>>, vector<8x1xf32>
      %148 = tpu.reciprocal %147 {approx = true} : vector<8x1xf32> -> vector<8x1xf32>
      %c0_89 = arith.constant 0 : index
      %c24_90 = arith.constant 24 : index
      %149 = vector.load %arg8[%c0_89, %c24_90] : memref<8x32xf32, #tpu.memory_space<vmem>>, vector<8x8xf32>
      %150 = vector.broadcast %148 : vector<8x1xf32> to vector<8x8xf32>
      %151 = arith.mulf %149, %150 : vector<8x8xf32>
      %152 = tpu.concatenate %136, %141, %146, %151 in 1 : vector<8x8xf32>, vector<8x8xf32>, vector<8x8xf32>, vector<8x8xf32> -> vector<8x32xf32>
      %153 = arith.truncf %152 : vector<8x32xf32> to vector<8x32xbf16>
      %c0_91 = arith.constant 0 : index
      %c0_92 = arith.constant 0 : index
      %c0_93 = arith.constant 0 : index
      %154 = vector.load %arg7[%c0_91, %c0_92, %c0_93] : memref<1x8x32xbf16, #tpu.memory_space<vmem>>, vector<1x8x32xbf16>
      %155 = vector.shape_cast %154 : vector<1x8x32xbf16> to vector<8x32xbf16>
      %156 = vector.shape_cast %153 : vector<8x32xbf16> to vector<1x8x32xbf16>
      tpu.vector_store %arg7[%c0_91, %c0_92, %c0_93], %156 {strides = array<i32>} : memref<1x8x32xbf16, #tpu.memory_space<vmem>>, vector<1x8x32xbf16>,
    } else {
    }
    return
  }
  func.func @transform_0(%arg0: i32, %arg1: i32, %arg2: i32) -> (i32, i32, i32) {
    %c0_i32 = arith.constant 0 : i32
    %c0_i32_0 = arith.constant 0 : i32
    return %arg0, %arg1, %c0_i32 : i32, i32, i32
  }
  func.func @transform_1(%arg0: i32, %arg1: i32, %arg2: i32) -> (i32, i32, i32) {
    %c0_i32 = arith.constant 0 : i32
    %c0_i32_0 = arith.constant 0 : i32
    return %arg0, %arg2, %c0_i32 : i32, i32, i32
  }
  func.func @transform_2(%arg0: i32, %arg1: i32, %arg2: i32) -> (i32, i32, i32) {
    %c0_i32 = arith.constant 0 : i32
    %c0_i32_0 = arith.constant 0 : i32
    return %arg0, %arg2, %c0_i32 : i32, i32, i32
  }
  func.func @transform_3(%arg0: i32, %arg1: i32, %arg2: i32) -> (i32, i32, i32) {
    %c0_i32 = arith.constant 0 : i32
    return %arg0, %arg1, %arg2 : i32, i32, i32
  }
  func.func @transform_4(%arg0: i32, %arg1: i32, %arg2: i32) -> (i32, i32, i32) {
    %c0_i32 = arith.constant 0 : i32
    %c0_i32_0 = arith.constant 0 : i32
    return %arg0, %arg1, %c0_i32 : i32, i32, i32
  }
}

</mosaic_0001>

<bundles_post_ra>
// kernel: multi_head_attention.5
= control target key start
LH: loop header
LB: loop body
LE: loop exit
PB: predicated region body
PF: predicated region fallthrough
CT: control target
= control target key end

     0   :  { %vm20_vm0 = vcmask 261120   ;;  %v169_v2 = vmov 0.0   ;;  %vm170_vm1 = vmmov 0   ;;  %s233_s0 = inlined_call_operand.vmem [shape: bf16[16,32], index: 0, kind: input, shape index: {}]   ;;  %s234_s1 = inlined_call_operand.vmem [shape: f32[32,32], index: 1, kind: input, shape index: {}]   ;;  %s235_s2 = inlined_call_operand.vmem [shape: f32[1,32], index: 2, kind: input, shape index: {}]   ;;  %s236_s3 = inlined_call_operand.hbm [shape: f32[16,32], index: 3, kind: output, shape index: {}]  }
   0x1   :  { %v27_v0 = vld [vmem:[%s234_s1] sm:$0xff]  ;;  %v28_v1 = vld [vmem:[%s234_s1 + $0x8] sm:$0xff]  ;;  %131 = vmatprep.subr.bf16.mxu0 %v169_v2  ;;  %21 = vst.msk [vmem:[#allocation2] sm:$0xff] %vm20_vm0, %v169_v2  ;;  %22 = vst.msk [vmem:[#allocation2 + $0x8] sm:$0xff] %vm20_vm0, %v169_v2  ;;  %135 = vmatprep.mubr.msk.bf16.mxu0 %vm170_vm1, %v169_v2 }
   0x2   :  { %v31_v3 = vpack.c.bf16 %v28_v1, %v27_v0  ;;  %v29_v4 = vld [vmem:[%s234_s1 + $0x10] sm:$0xff]  ;;  %v30_v5 = vld [vmem:[%s234_s1 + $0x18] sm:$0xff] }
   0x3   :  { %8 = vsyncpa [#allocation3], 0  ;;  %v32_v7 = vpack.c.bf16 %v30_v5, %v29_v4  ;;  %v144_v9 = vld [vmem:[%s233_s0] sm:$0xff]   ;;  %s171_s23 = smov [#allocation2]  }
   0x4   :  { %v43_v6 = vsel %vm20_vm0, %v31_v3, 0  ;;  %v127_v18 = vld [vmem:[%s235_s2] ss:$0 sm:$0xff]  ;;  %s114_s0 = sshll.u32 %s171_s23, 4  ;;  %s115_s0 = int_to_ptr.vmem [resolvable:$true] %s114_s0 }
   0x5   :  { %132 = vmatpush3.bf16.xpose.msra.mxu0 %v43_v6  ;;  %v46_v8 = vsel %vm20_vm0, %v32_v7, 0  ;;  %s145_s24 = scalar_lea.vmem %s115_s0, 256  ;;  %p150_p1 = scmp.lt.s32.totalorder %s115_s0, %s115_s0 }
   0x6   :  { %133 = vmatprep.subr.bf16.mxu0 %v169_v2  ;;  %p146_p0 = scmp.ne.s32.totalorder %s115_s0, %s145_s24  ;;  %p151_p2 = scmp.lt.s32.totalorder %s145_s24, %s145_s24 }
   0x8   :  { %v23_v10 = vld [vmem:[#allocation2] sm:$0xff]  ;;  %v24_v12 = vld [vmem:[#allocation2 + $0x8] sm:$0xff]  ;;  %p152_p3 = por %p151_p2, %p150_p1 }
   0xa   :  { %p153_p4 = pnand %p152_p3, %p146_p0 }
   0xd   :  { %134 = vmatpush3.bf16.xpose.msra.mxu0 %v46_v8 }
  0x14   :  { %136 = vmatmul.mubr.msk.bf16.vlgmr.msra.gmra.mrb[0].mxu0 %vm20_vm0, %v144_v9 }
  0xe7   :  { %v82_v11 = vpop.f32.mrb[0].mxu0 }
  0xe8   :  { %v89_v13 = vadd.f32 %v82_v11, %v23_v10  ;;  %v137_v14 = vpop.f32.mrb[1].mxu0 }
  0xe9   :  { %v85_v15 = vpop.f32.mrb[2].mxu0 }
  0xea   :  { %91 = vst.msk [vmem:[#allocation2] sm:$0xff] %vm20_vm0, %v89_v13  ;;  %v90_v16 = vadd.f32 %v85_v15, %v24_v12  ;;  %v138_v17 = vpop.f32.mrb[3].mxu0 }
  0xec   :  { %92 = vst.msk [vmem:[#allocation2 + $0x8] sm:$0xff] %vm20_vm0, %v90_v16 }
  0xf1   :  { %v96_v19 = vld [vmem:[#allocation2] sm:$0xff] }
  0xf2   :  { %v105_v20 = vadd.f32 %v127_v18, %v96_v19 }
  0xf3   :  { %v97_v21 = vld [vmem:[#allocation2 + $0x8] sm:$0xff] }
  0xf4   :  { %v106_v22 = vadd.f32 %v127_v18, %v97_v21  ;;  %107 = vst.msk [vmem:[#allocation2] sm:$0xff] %vm20_vm0, %v105_v20 }
  0xf6   :  { %108 = vst.msk [vmem:[#allocation2 + $0x8] sm:$0xff] %vm20_vm0, %v106_v22 }
  0xf7   :  { %156 = shalt.err (!%p153_p4)
}
  0xf8   :  { %s157_s26 = scalar_lea.hbm %s236_s3, 256 }
  0xf9   :  { %p158_p5 = scmp.ne.s32.totalorder %s236_s3, %s157_s26  ;;  %p161_p6 = scmp.lt.u32.totalorder %s157_s26, %s236_s3 }
  0xfb   :  { %p163_p7 = pnand %p161_p6, %p158_p5 }
  0xfd   :  { %166 = shalt.err (!%p163_p7)
}
  0xfe   :  { %s172_s4 = smov 128   ;;  %s173_s5 = smov 8  }
  0xff   :  { %120 = dma.vmem_to_hbm [thread:$0]  %s115_s0, 256, %s236_s3, [#allocation3], %s172_s4, %s172_s4, %s173_s5  }
 0x100   :  { %167 = dma.done.wait [#allocation3], 256  }
 0x101   :  { %168 = vsyncadd [#allocation3], 4294967040 }
 0x102   :  { %124 = vsyncpa [#allocation3], 1 }

// kernel: multi_head_attention.3
= control target key start
LH: loop header
LB: loop body
LE: loop exit
PB: predicated region body
PF: predicated region fallthrough
CT: control target
= control target key end

     0   :  { %17 = vsyncpa [#allocation4], 0  ;;  %s896_s0 = inlined_call_operand.hbm [shape: f32[16,32], index: 0, kind: input, shape index: {}]   ;;  %s897_s1 = inlined_call_operand.hbm [shape: f32[16,32], index: 1, kind: input, shape index: {}]   ;;  %s898_s2 = inlined_call_operand.hbm [shape: f32[16,32], index: 2, kind: input, shape index: {}]   ;;  %s899_s3 = inlined_call_operand.vmem [shape: f32[32,32], index: 3, kind: input, shape index: {}]   ;;  %s900_s4 = inlined_call_operand.vmem [shape: f32[32,32], index: 4, kind: input, shape index: {}]   ;;  %s901_s5 = inlined_call_operand.hbm [shape: f32[32,32], index: 5, kind: input, shape index: {}]   ;;  %s902_s6 = inlined_call_operand.hbm [shape: f32[1,32], index: 6, kind: input, shape index: {}]   ;;  %s903_s7 = inlined_call_operand.hbm [shape: f32[1,32], index: 7, kind: input, shape index: {}]   ;;  %s904_s8 = inlined_call_operand.hbm [shape: f32[1,32], index: 8, kind: input, shape index: {}]   ;;  %s905_s9 = inlined_call_operand.vmem [shape: bf16[16,32], index: 9, kind: output, shape index: {0}]   ;;  %s906_s10 = inlined_call_operand.vmem [shape: bf16[16,32], index: 10, kind: output, shape index: {1}]   ;;  %s907_s11 = inlined_call_operand.vmem [shape: bf16[16,32], index: 11, kind: output, shape index: {2}]  }
   0x1   :  { %18 = vsyncpa [#allocation6], 0 }
   0x2   :  { %19 = vsyncpa [#allocation9], 0 }
   0x3   :  { %20 = vsyncpa [#allocation12], 0  ;;  %s643_s17 = smov [#allocation5]   ;;  %s644_s19 = smov [#allocation8]  }
   0x4   :  { %s38_s18 = sshll.u32 %s643_s17, 4  ;;  %s66_s20 = sshll.u32 %s644_s19, 4  ;;  %s39_s18 = int_to_ptr.vmem [resolvable:$true] %s38_s18  ;;  %s714_s20 = int_to_ptr.vmem [resolvable:$true] %s66_s20 }
   0x5   :  { %s481_s23 = scalar_lea.hbm %s897_s1, 256 }
   0x6   :  { %p482_p0 = scmp.ne.s32.totalorder %s897_s1, %s481_s23  ;;  %p485_p1 = scmp.lt.u32.totalorder %s481_s23, %s897_s1 }
   0x8   :  { %p487_p2 = pnand %p485_p1, %p482_p0 }
   0xa   :  { %490 = shalt.err (!%p487_p2)
}
   0xb   :  { %s491_s28 = scalar_lea.vmem %s39_s18, 256  ;;  %p496_p4 = scmp.lt.s32.totalorder %s39_s18, %s39_s18 }
   0xc   :  { %p492_p3 = scmp.ne.s32.totalorder %s39_s18, %s491_s28  ;;  %p497_p5 = scmp.lt.s32.totalorder %s491_s28, %s491_s28 }
   0xe   :  { %p498_p6 = por %p497_p5, %p496_p4 }
  0x10   :  { %p499_p7 = pnand %p498_p6, %p492_p3 }
  0x12   :  { %502 = shalt.err (!%p499_p7)
}
  0x13   :  { %s645_s29 = smov 128   ;;  %s646_s30 = smov 8  }
  0x14   :  { %44 = dma.hbm_to_vmem [thread:$0]  %s897_s1, 256, %s39_s18, [#allocation6], %s645_s29, %s645_s29, %s646_s30  }
  0x15   :  { %s503_s16 = scalar_lea.hbm %s901_s5, 512 }
  0x16   :  { %p504_p8 = scmp.ne.s32.totalorder %s901_s5, %s503_s16  ;;  %p507_p9 = scmp.lt.u32.totalorder %s503_s16, %s901_s5 }
  0x18   :  { %p509_p10 = pnand %p507_p9, %p504_p8 }
  0x1a   :  { %512 = shalt.err (!%p509_p10)
}
  0x1b   :  { %s513_s23 = scalar_lea.vmem %s714_s20, 512  ;;  %p518_p12 = scmp.lt.s32.totalorder %s714_s20, %s714_s20 }
  0x1c   :  { %p514_p11 = scmp.ne.s32.totalorder %s714_s20, %s513_s23  ;;  %p519_p13 = scmp.lt.s32.totalorder %s513_s23, %s513_s23 }
  0x1e   :  { %p520_p0 = por %p519_p13, %p518_p12 }
  0x20   :  { %p521_p1 = pnand %p520_p0, %p514_p11 }
  0x22   :  { %524 = shalt.err (!%p521_p1)
}
  0x23   :  { %72 = dma.hbm_to_vmem [thread:$0]  %s901_s5, 512, %s714_s20, [#allocation9], %s645_s29, %s645_s29, %s646_s30  }
  0x24   :  { %s647_s24 = smov [#allocation11]   ;;  %s648_s26 = smov [#allocation3]  }
  0x25   :  { %s89_s25 = sshll.u32 %s647_s24, 4  ;;  %s26_s27 = sshll.u32 %s648_s26, 4  ;;  %s90_s25 = int_to_ptr.vmem [resolvable:$true] %s89_s25  ;;  %s751_s27 = int_to_ptr.vmem [resolvable:$true] %s26_s27 }
  0x26   :  { %s525_s13 = scalar_lea.hbm %s903_s7, 16 }
  0x27   :  { %p526_p2 = scmp.ne.s32.totalorder %s903_s7, %s525_s13  ;;  %p529_p3 = scmp.lt.u32.totalorder %s525_s13, %s903_s7 }
  0x29   :  { %p531_p4 = pnand %p529_p3, %p526_p2 }
  0x2b   :  { %534 = shalt.err (!%p531_p4)
}
  0x2c   :  { %s535_s5 = scalar_lea.vmem %s90_s25, 16  ;;  %s539_s20 = scalar_lea.vmem %s90_s25, 32 }
  0x2d   :  { %p536_p5 = scmp.ne.s32.totalorder %s90_s25, %s535_s5  ;;  %p540_p6 = scmp.lt.s32.totalorder %s90_s25, %s90_s25 }
  0x2e   :  { %p541_p7 = scmp.lt.s32.totalorder %s539_s20, %s535_s5 }
  0x30   :  { %p542_p8 = por %p541_p7, %p540_p6 }
  0x32   :  { %p543_p9 = pnand %p542_p8, %p536_p5 }
  0x34   :  { %546 = shalt.err (!%p543_p9)
}
  0x35   :  { %92 = dma.hbm_to_vmem [thread:$0]  %s903_s7, 16, %s90_s25, [#allocation12]  }
  0x36   :  { %s547_s1 = scalar_lea.hbm %s896_s0, 256 }
  0x37   :  { %p548_p10 = scmp.ne.s32.totalorder %s896_s0, %s547_s1  ;;  %p551_p11 = scmp.lt.u32.totalorder %s547_s1, %s896_s0 }
  0x39   :  { %p553_p12 = pnand %p551_p11, %p548_p10 }
  0x3b   :  { %556 = shalt.err (!%p553_p12)
}
  0x3c   :  { %s557_s12 = scalar_lea.vmem %s751_s27, 256  ;;  %p562_p0 = scmp.lt.s32.totalorder %s751_s27, %s751_s27 }
  0x3d   :  { %p558_p13 = scmp.ne.s32.totalorder %s751_s27, %s557_s12  ;;  %p563_p1 = scmp.lt.s32.totalorder %s557_s12, %s557_s12 }
  0x3f   :  { %p564_p2 = por %p563_p1, %p562_p0 }
  0x41   :  { %p565_p3 = pnand %p564_p2, %p558_p13 }
  0x43   :  { %568 = shalt.err (!%p565_p3)
}
  0x44   :  { %32 = dma.hbm_to_vmem [thread:$0]  %s896_s0, 256, %s751_s27, [#allocation4], %s645_s29, %s645_s29, %s646_s30  }
  0x45   :  { %s649_s13 = smov [#allocation7]   ;;  %s650_s15 = smov [#allocation10]  }
  0x46   :  { %s50_s14 = sshll.u32 %s649_s13, 4  ;;  %s79_s16 = sshll.u32 %s650_s15, 4  ;;  %s51_s14 = int_to_ptr.vmem [resolvable:$true] %s50_s14  ;;  %s80_s16 = int_to_ptr.vmem [resolvable:$true] %s79_s16 }
  0x47   :  { %s569_s20 = scalar_lea.hbm %s898_s2, 256 }
  0x48   :  { %p570_p4 = scmp.ne.s32.totalorder %s898_s2, %s569_s20  ;;  %p573_p5 = scmp.lt.u32.totalorder %s569_s20, %s898_s2 }
  0x4a   :  { %p575_p6 = pnand %p573_p5, %p570_p4 }
  0x4c   :  { %578 = shalt.err (!%p575_p6)
}
  0x4d   :  { %s579_s0 = scalar_lea.vmem %s51_s14, 256  ;;  %p584_p8 = scmp.lt.s32.totalorder %s51_s14, %s51_s14 }
  0x4e   :  { %p580_p7 = scmp.ne.s32.totalorder %s51_s14, %s579_s0  ;;  %p585_p9 = scmp.lt.s32.totalorder %s579_s0, %s579_s0 }
  0x50   :  { %p586_p10 = por %p585_p9, %p584_p8 }
  0x52   :  { %p587_p11 = pnand %p586_p10, %p580_p7 }
  0x54   :  { %590 = shalt.err (!%p587_p11)
}
  0x55   :  { %56 = dma.hbm_to_vmem [thread:$0]  %s898_s2, 256, %s51_s14, [#allocation6], %s645_s29, %s645_s29, %s646_s30  }
  0x56   :  { %s591_s26 = scalar_lea.hbm %s902_s6, 16 }
  0x57   :  { %p592_p12 = scmp.ne.s32.totalorder %s902_s6, %s591_s26  ;;  %p595_p13 = scmp.lt.u32.totalorder %s591_s26, %s902_s6 }
  0x59   :  { %p597_p0 = pnand %p595_p13, %p592_p12 }
  0x5b   :  { %600 = shalt.err (!%p597_p0)
}
  0x5c   :  { %s601_s13 = scalar_lea.vmem %s80_s16, 16  ;;  %s605_s15 = scalar_lea.vmem %s80_s16, 32 }
  0x5d   :  { %p602_p1 = scmp.ne.s32.totalorder %s80_s16, %s601_s13  ;;  %p606_p2 = scmp.lt.s32.totalorder %s80_s16, %s80_s16 }
  0x5e   :  { %p607_p3 = scmp.lt.s32.totalorder %s605_s15, %s601_s13 }
  0x60   :  { %p608_p4 = por %p607_p3, %p606_p2 }
  0x62   :  { %p609_p5 = pnand %p608_p4, %p602_p1 }
  0x64   :  { %612 = shalt.err (!%p609_p5)
}
  0x65   :  { %82 = dma.hbm_to_vmem [thread:$0]  %s902_s6, 16, %s80_s16, [#allocation9]  }
  0x66   :  { %s651_s30 = smov [#allocation13]   ;;  %s613_s20 = scalar_lea.hbm %s904_s8, 16 }
  0x67   :  { %s99_s14 = sshll.u32 %s651_s30, 4  ;;  %p614_p6 = scmp.ne.s32.totalorder %s904_s8, %s613_s20  ;;  %s100_s14 = int_to_ptr.vmem [resolvable:$true] %s99_s14 }
  0x68   :  { %p617_p7 = scmp.lt.u32.totalorder %s613_s20, %s904_s8 }
  0x6a   :  { %p619_p8 = pnand %p617_p7, %p614_p6 }
  0x6c   :  { %622 = shalt.err (!%p619_p8)
}
  0x6d   :  { %s623_s0 = scalar_lea.vmem %s100_s14, 16  ;;  %s627_s6 = scalar_lea.vmem %s100_s14, 32 }
  0x6e   :  { %p624_p9 = scmp.ne.s32.totalorder %s100_s14, %s623_s0  ;;  %p628_p10 = scmp.lt.s32.totalorder %s100_s14, %s100_s14 }
  0x6f   :  { %p629_p11 = scmp.lt.s32.totalorder %s627_s6, %s623_s0 }
  0x71   :  { %p630_p12 = por %p629_p11, %p628_p10 }
  0x73   :  { %p631_p13 = pnand %p630_p12, %p624_p9 }
  0x75   :  { %634 = shalt.err (!%p631_p13)
}
  0x76   :  { %102 = dma.hbm_to_vmem [thread:$0]  %s904_s8, 16, %s100_s14, [#allocation12]  }
  0x77   :  { %635 = dma.done.wait [#allocation4], 256  }
  0x78   :  { %636 = vsyncadd [#allocation4], 4294967040 }
  0x79   :  { %637 = dma.done.wait [#allocation6], 512  }
  0x7a   :  { %638 = vsyncadd [#allocation6], 4294966784 }
  0x7b   :  { %639 = dma.done.wait [#allocation9], 528  }
  0x7c   :  { %640 = vsyncadd [#allocation9], 4294966768 }
  0x7d   :  { %641 = dma.done.wait [#allocation12], 32  }
  0x7e   :  { %642 = vsyncadd [#allocation12], 4294967264  ;;  %vm129_vm0 = vcmask 261120   ;;  %v652_v0 = vmov 0.0   ;;  %vm653_vm1 = vmmov 0   ;;  %v147_v1 = vld [vmem:[%s899_s3] sm:$0xff] }
  0x7f   :  { %446 = vmatprep.subr.bf16.mxu0 %v652_v0  ;;  %130 = vst.msk [vmem:[#allocation2] sm:$0xff] %vm129_vm0, %v652_v0  ;;  %131 = vst.msk [vmem:[#allocation2 + $0x8] sm:$0xff] %vm129_vm0, %v652_v0  ;;  %454 = vmatprep.subr.bf16.mxu1 %v652_v0  ;;  %v148_v2 = vld [vmem:[%s899_s3 + $0x8] sm:$0xff]  ;;  %v211_v4 = vld [vmem:[%s900_s4] sm:$0xff]  ;;  %vm358_vm2 = vcmask 257024  }
  0x80   :  { %132 = vst.msk [vmem:[#allocation2 + $0x10] sm:$0xff] %vm129_vm0, %v652_v0  ;;  %133 = vst.msk [vmem:[#allocation2 + $0x18] sm:$0xff] %vm129_vm0, %v652_v0  ;;  %450 = vmatprep.mubr.msk.bf16.mxu0 %vm653_vm1, %v652_v0  ;;  %458 = vmatprep.mubr.msk.bf16.mxu1 %vm653_vm1, %v652_v0  ;;  %v151_v3 = vpack.c.bf16 %v148_v2, %v147_v1  ;;  %v212_v5 = vld [vmem:[%s900_s4 + $0x8] sm:$0xff]  ;;  %v149_v6 = vld [vmem:[%s899_s3 + $0x10] sm:$0xff] }
  0x81   :  { %134 = vst.msk [vmem:[#allocation2 + $0x20] sm:$0xff] %vm129_vm0, %v652_v0  ;;  %135 = vst.msk [vmem:[#allocation2 + $0x28] sm:$0xff] %vm129_vm0, %v652_v0  ;;  %v150_v7 = vld [vmem:[%s899_s3 + $0x18] sm:$0xff]  ;;  %v215_v8 = vpack.c.bf16 %v212_v5, %v211_v4  ;;  %v213_v10 = vld [vmem:[%s900_s4 + $0x10] sm:$0xff] }
  0x82   :  { %v158_v9 = vsel %vm129_vm0, %v151_v3, 0  ;;  %v214_v11 = vld [vmem:[%s900_s4 + $0x18] sm:$0xff]  ;;  %v152_v13 = vpack.c.bf16 %v150_v7, %v149_v6  ;;  %v274_v16 = vld [vmem:[#allocation8] sm:$0xff]  ;;  %v275_v17 = vld [vmem:[#allocation8 + $0x8] sm:$0xff] }
  0x83   :  { %447 = vmatpush3.bf16.xpose.msra.mxu0 %v158_v9  ;;  %v221_v12 = vsel %vm129_vm0, %v215_v8, 0  ;;  %v216_v14 = vpack.c.bf16 %v214_v11, %v213_v10  ;;  %v136_v19 = vld [vmem:[#allocation3] sm:$0xff]  ;;  %v137_v20 = vld [vmem:[#allocation3 + $0x8] sm:$0xff]  ;;  %v278_v21 = vpack.c.bf16 %v275_v17, %v274_v16  ;;  %v139_v22 = vld [vmem:[#allocation5] sm:$0xff] }
  0x84   :  { %448 = vmatprep.subr.bf16.mxu0 %v652_v0  ;;  %455 = vmatpush3.bf16.xpose.msra.mxu1 %v221_v12  ;;  %v161_v15 = vsel %vm129_vm0, %v152_v13, 0  ;;  %v140_v23 = vld [vmem:[#allocation5 + $0x8] sm:$0xff]  ;;  %v138_v24 = vpack.c.bf16 %v137_v20, %v136_v19  ;;  %v276_v27 = vld [vmem:[#allocation8 + $0x10] sm:$0xff]  ;;  %v277_v28 = vld [vmem:[#allocation8 + $0x18] sm:$0xff] }
  0x85   :  { %456 = vmatprep.subr.bf16.mxu1 %v652_v0  ;;  %v224_v18 = vsel %vm129_vm0, %v216_v14, 0  ;;  %v141_v25 = vpack.c.bf16 %v140_v23, %v139_v22  ;;  %v284_v26 = vsel %vm129_vm0, %v278_v21, 0  ;;  %v279_v29 = vpack.c.bf16 %v277_v28, %v276_v27  ;;  %v142_v31 = vld [vmem:[#allocation7] sm:$0xff]  ;;  %v143_v32 = vld [vmem:[#allocation7 + $0x8] sm:$0xff]  ;;  %v422_v50 = vld [vmem:[#allocation10] ss:$0 sm:$0xff] }
  0x86   :  { %v144_v33 = vpack.c.bf16 %v143_v32, %v142_v31  ;;  %v145_v34 = vld [vmem:[#allocation2] sm:$0xff]  ;;  %v146_v37 = vld [vmem:[#allocation2 + $0x8] sm:$0xff] }
  0x87   :  { %v287_v30 = vsel %vm129_vm0, %v279_v29, 0  ;;  %v209_v35 = vld [vmem:[#allocation2 + $0x10] sm:$0xff]  ;;  %v210_v41 = vld [vmem:[#allocation2 + $0x18] sm:$0xff]  ;;  %v425_v51 = vld [vmem:[#allocation11] ss:$0 sm:$0xff] }
  0x88   :  { %v272_v62 = vld [vmem:[#allocation2 + $0x20] sm:$0xff]  ;;  %v273_v3 = vld [vmem:[#allocation2 + $0x28] sm:$0xff] }
  0x89   :  { %v428_v10 = vld [vmem:[#allocation13] ss:$0 sm:$0xff] }
  0x8b   :  { %449 = vmatpush3.bf16.xpose.msra.mxu0 %v161_v15 }
  0x8c   :  { %462 = vmatprep.subr.bf16.mxu0 %v652_v0  ;;  %457 = vmatpush3.bf16.xpose.msra.mxu1 %v224_v18 }
  0x92   :  { %451 = vmatmul.mubr.msk.bf16.vlgmr.msra.gmra.mrb[0].mxu0 %vm129_vm0, %v138_v24 }
  0x93   :  { %463 = vmatpush3.bf16.xpose.msra.mxu0 %v284_v26  ;;  %459 = vmatmul.mubr.msk.bf16.vlgmr.msra.gmra.mrb[0].mxu1 %vm129_vm0, %v141_v25 }
  0x94   :  { %464 = vmatprep.subr.bf16.mxu0 %v652_v0  ;;  %466 = vmatprep.mubr.msk.bf16.mxu0 %vm653_vm1, %v652_v0 }
  0x9b   :  { %465 = vmatpush3.bf16.xpose.msra.mxu0 %v287_v30 }
  0xa2   :  { %467 = vmatmul.mubr.msk.bf16.vlgmr.msra.gmra.mrb[4].mxu0 %vm129_vm0, %v144_v33 }
 0x165   :  { %v197_v36 = vpop.f32.mrb[0].mxu0 }
 0x166   :  { %v204_v38 = vadd.f32 %v197_v36, %v145_v34  ;;  %v452_v39 = vpop.f32.mrb[1].mxu0  ;;  %v260_v40 = vpop.f32.mrb[0].mxu1 }
 0x167   :  { %v200_v42 = vpop.f32.mrb[2].mxu0  ;;  %v267_v43 = vadd.f32 %v260_v40, %v209_v35  ;;  %v460_v44 = vpop.f32.mrb[1].mxu1 }
 0x168   :  { %206 = vst.msk [vmem:[#allocation2] sm:$0xff] %vm129_vm0, %v204_v38  ;;  %v205_v45 = vadd.f32 %v200_v42, %v146_v37  ;;  %v453_v46 = vpop.f32.mrb[3].mxu0  ;;  %v263_v47 = vpop.f32.mrb[2].mxu1 }
 0x169   :  { %269 = vst.msk [vmem:[#allocation2 + $0x10] sm:$0xff] %vm129_vm0, %v267_v43  ;;  %v268_v48 = vadd.f32 %v263_v47, %v210_v41  ;;  %v461_v49 = vpop.f32.mrb[3].mxu1 }
 0x16a   :  { %207 = vst.msk [vmem:[#allocation2 + $0x8] sm:$0xff] %vm129_vm0, %v205_v45 }
 0x16b   :  { %270 = vst.msk [vmem:[#allocation2 + $0x18] sm:$0xff] %vm129_vm0, %v268_v48 }
 0x16f   :  { %v337_v52 = vld [vmem:[#allocation2] sm:$0xff] }
 0x170   :  { %v346_v53 = vadd.f32 %v422_v50, %v337_v52  ;;  %v361_v54 = vld [vmem:[#allocation2 + $0x10] sm:$0xff] }
 0x171   :  { %v338_v55 = vld [vmem:[#allocation2 + $0x8] sm:$0xff]  ;;  %v370_v56 = vadd.f32 %v425_v51, %v361_v54 }
 0x172   :  { %v348_v57 = vmul.f32 0.35355338, %v346_v53  ;;  %v347_v58 = vadd.f32 %v422_v50, %v338_v55  ;;  %v362_v59 = vld [vmem:[#allocation2 + $0x18] sm:$0xff] }
 0x173   :  { %v433_v60 = vpack.c.bf16 %v370_v56, %v370_v56  ;;  %v371_v61 = vadd.f32 %v425_v51, %v362_v59 }
 0x174   :  { %v431_v63 = vpack.c.bf16 %v348_v57, %v348_v57  ;;  %v349_v0 = vmul.f32 0.35355338, %v347_v58 }
 0x175   :  { %380 = vst.msk [vmem:[%s906_s10] sm:$0xf] %vm358_vm2, %v433_v60  ;;  %v434_v1 = vpack.c.bf16 %v371_v61, %v371_v61  ;;  %v323_v2 = vpop.f32.mrb[4].mxu0 }
 0x176   :  { %359 = vst.msk [vmem:[%s905_s9] sm:$0xf] %vm358_vm2, %v431_v63  ;;  %v432_v4 = vpack.c.bf16 %v349_v0, %v349_v0  ;;  %v330_v5 = vadd.f32 %v323_v2, %v272_v62  ;;  %v468_v6 = vpop.f32.mrb[5].mxu0 }
 0x177   :  { %381 = vst.msk [vmem:[%s906_s10 + $0x4] sm:$0xf] %vm358_vm2, %v434_v1  ;;  %v326_v7 = vpop.f32.mrb[6].mxu0 }
 0x178   :  { %360 = vst.msk [vmem:[%s905_s9 + $0x4] sm:$0xf] %vm358_vm2, %v432_v4  ;;  %v331_v8 = vadd.f32 %v326_v7, %v273_v3  ;;  %v469_v9 = vpop.f32.mrb[7].mxu0 }
 0x179   :  { %332 = vst.msk [vmem:[#allocation2 + $0x20] sm:$0xff] %vm129_vm0, %v330_v5 }
 0x17a   :  { %333 = vst.msk [vmem:[#allocation2 + $0x28] sm:$0xff] %vm129_vm0, %v331_v8 }
 0x180   :  { %v382_v11 = vld [vmem:[#allocation2 + $0x20] sm:$0xff] }
 0x181   :  { %v391_v12 = vadd.f32 %v428_v10, %v382_v11  ;;  %v383_v13 = vld [vmem:[#allocation2 + $0x28] sm:$0xff] }
 0x182   :  { %v392_v15 = vadd.f32 %v428_v10, %v383_v13 }
 0x183   :  { %v435_v14 = vpack.c.bf16 %v391_v12, %v391_v12 }
 0x184   :  { %v436_v16 = vpack.c.bf16 %v392_v15, %v392_v15 }
 0x185   :  { %401 = vst.msk [vmem:[%s907_s11] sm:$0xf] %vm358_vm2, %v435_v14 }
 0x186   :  { %402 = vst.msk [vmem:[%s907_s11 + $0x4] sm:$0xf] %vm358_vm2, %v436_v16 }
 0x187   :  { %415 = vsyncpa [#allocation4], 1 }
 0x188   :  { %416 = vsyncpa [#allocation6], 1 }
 0x189   :  { %417 = vsyncpa [#allocation9], 1 }
 0x18a   :  { %418 = vsyncpa [#allocation12], 1 }

// kernel: multi_head_attention.4
= control target key start
LH: loop header
LB: loop body
LE: loop exit
PB: predicated region body
PF: predicated region fallthrough
CT: control target
= control target key end

     0   :  { %s1281_s15 = smov 0   ;;  %s1283_s16 = smov 0   ;;  %s1481_s0 = inlined_call_operand.vmem [shape: bf16[2,8,32], index: 0, kind: input, shape index: {}]   ;;  %s1482_s1 = inlined_call_operand.vmem [shape: bf16[2,8,32], index: 1, kind: input, shape index: {}]   ;;  %s1483_s2 = inlined_call_operand.vmem [shape: bf16[2,8,32], index: 2, kind: input, shape index: {}]   ;;  %s1484_s3 = inlined_call_operand.vmem [shape: s8[2,8,8], index: 3, kind: input, shape index: {}]   ;;  %s1485_s4 = inlined_call_operand.vmem [shape: bf16[2,8,32], index: 4, kind: output, shape index: {}]  }
   0x1   :  { %s1285_s17 = smov 0  }
   0x2 LB: > { %s33_s18 = sadd.s32 1, %s1237_s16  ;;  %p1066_p0 = scmp.ge.s32.totalorder %s1241_s17, 1  ;;  %s1241_s17 = sphi %s1285_s17, %s14_s17   ;;  %s1237_s16 = sphi %s1283_s16, %s1489_s16   ;;  %s1233_s15 = sphi %s1281_s15, %s1488_s15  }
   0x3   : > { %p35_p1 = scmp.ge.s32.totalorder %s33_s18, 2  ;;  %p234_p2 = scmp.lt.s32.totalorder %s1241_s17, 3 }
   0x5   : > { %s1491_s18 = smov (%p35_p1, %s33_s18), 0  ;;  %p235_p3 = pnand %p1066_p0, %p234_p2 }
   0x6   : > { %p288_p4 = scmp.lt.s32.totalorder (!%p235_p3), %s1233_s15, 1  ;;  %v1243_v0 = vmov (!%p235_p3), 0.0   ;;  %vm1244_vm0 = vmmov (!%p235_p3), 0   ;;  %vm343_vm1 = vcmask (!%p235_p3), 64512   ;;  %v1245_v4 = vmov (!%p235_p3), 0   ;;  %s1247_s30 = smov (!%p235_p3), 120  }
   0x7   : > { %238 = sbr.rel (%p235_p3) target bundleno = 1417 (0x589), region = 36  ;;  %1101 = vmatprep.subr.bf16.mxu0 (!%p235_p3), %v1243_v0  ;;  %1103 = vmatprep.mubr.msk.bf16.mxu0 (!%p235_p3), %vm1244_vm0, %v1243_v0  ;;  %vm335_vm2 = vcmask (!%p235_p3), 31744   ;;  %v1246_v5 = vmov (!%p235_p3), -1e+30   ;;  %s1248_s5 = smov (!%p235_p3), 112   ;;  %vm416_vm5 = vcmask (!%p235_p3), 7168  }
   0x8   : > { %1107 = vmatprep.subr.bf16.mxu1 (!%p235_p3), %v1243_v0  ;;  %1109 = vmatprep.mubr.msk.bf16.mxu1 (!%p235_p3), %vm1244_vm0, %v1243_v0  ;;  %336 = vst.msk [vmem:[#allocation3] sm:$0xff] (!%p235_p3), %vm335_vm2, %v1246_v5  ;;  %337 = vst.msk [vmem:[#allocation4] sm:$0xff] (!%p235_p3), %vm335_vm2, %v1243_v0  ;;  %s1249_s6 = smov (!%p235_p3), 104   ;;  %vm429_vm6 = vcmask (!%p235_p3), 1043456   ;;  %v1250_v59 = vmov (!%p235_p3), 1   ;;  %v1251_v61 = vmov (!%p235_p3), 2  }
   0x9   : > { %1186 = vset.pattern.permute.xlu0 (!%p235_p3), %v1245_v4  ;;  %1187 = vset.pattern.permute.xlu1 (!%p235_p3), %v1250_v59  ;;  %vm555_vm7 = vcmask (!%p235_p3), 15368   ;;  %vm333_vm8 = vcmask (!%p235_p3), 261120   ;;  %vm697_vm9 = vcmask (!%p235_p3), 23568   ;;  %vm836_vm10 = vcmask (!%p235_p3), 31768   ;;  %s1253_s10 = smov (!%p235_p3), 8   ;;  %s1254_s11 = smov (!%p235_p3), 16  }
   0xa   : > { %334 = vst.msk [vmem:[#allocation2] sm:$0xff] (!%p235_p3), %vm333_vm8, %v1243_v0  ;;  %s1255_s12 = smov (!%p235_p3), 24   ;;  %vm621_vm11 = vcmask (!%p235_p3), 130112   ;;  %vm760_vm12 = vcmask (!%p235_p3), 195712   ;;  %vm899_vm13 = vcmask (!%p235_p3), 261312   ;;  %vm930_vm14 = vcmask (!%p235_p3), 130048  }
   0xb   : > { %vm932_vm15 = vcmask (!%p235_p3), 195584  }
   0xe   : > { %s1493_s15 = smov (!%p288_p4, %s1233_s15), 1 }
   0xf   : > { %s1305_s19 = sshll.u32 %s1493_s15, 2  ;;  %s1070_s26 = sshll.u32 %s1493_s15, 1  ;;  %v1339_v18 = vld [vmem:[#allocation3] sm:$0xff] }
  0x10   : > { %s301_s22 = scalar_lea.vmem %s1482_s1, %s1305_s19  ;;  %s294_s25 = scalar_lea.vmem %s1481_s0, %s1305_s19 }
  0x11   : > { %v339_v1 = vld [vmem:[%s301_s22] sm:$0xf]  ;;  %s318_s29 = scalar_lea.vmem %s1484_s3, %s1070_s26  ;;  %s308_s9 = scalar_lea.vmem %s1483_s2, %s1305_s19 }
  0x12   : > { %v348_v2 = vsel %vm343_vm1, %v339_v1, 0  ;;  %v338_v3 = vld [vmem:[%s294_s25] sm:$0xf]  ;;  %v1075_v16 = vcombine.low %v339_v1, %v339_v1  ;;  %s325_s15 = scalar_lea.vmem %s1485_s4, %s1305_s19 }
  0x13   : > { %1102 = vmatpush3.bf16.xpose.msra.mxu0 %v348_v2  ;;  %v341_v6 = vld [vmem:[%s318_s29] sm:$0x3]  ;;  %v1074_v17 = vcombine.low %v338_v3, %v338_v3 }
  0x14   : > { %1119 = vmatprep.subr.bf16.mxu0 %v1243_v0  ;;  %vm342_vm3 = vnez %v341_v6  ;;  %484 = vrot.lane.b32.xlu1 %v1075_v16, %s1247_s30  ;;  %v1353_v22 = vld [vmem:[%s308_s9] sm:$0xf]  ;;  %v1252_v6 = vmov 3  }
  0x15   : > { %v390_v7 = vsel %vm342_vm3, 16843009, %v1245_v4  ;;  %v431_v23 = vsel %vm429_vm6, %v1353_v22, 0 }
  0x16   : > { %v391_v8 = vunpack.c.0.s8 %v390_v7  ;;  %1108 = vmatpush3.bf16.msra.mxu1 %v431_v23 }
  0x17   : > { %1113 = vmatprep.subr.bf16.mxu1 %v1243_v0 }
  0x18   : > { %vm1326_vm4 = vcmp.ne.s32.totalorder %v391_v8, 0  ;;  %479 = vrot.lane.b32.xlu1 %v1074_v17, %s1247_s30 }
  0x1a   : > { %1104 = vmatmul.mubr.msk.bf16.vlgmr.msra.gmra.mrb[0].mxu0 %vm343_vm1, %v338_v3  ;;  %v1077_v3 = vcombine.low %v1353_v22, %v1353_v22 }
  0x1b   : > { %1121 = vmatprep.mubr.msk.bf16.mxu0 %vm1244_vm0, %v1243_v0 }
  0x1c   : > { %626 = vrot.lane.b32.xlu1 %v1075_v16, %s1248_s5 }
  0x20   : > { %624 = vrot.lane.b32.xlu1 %v1074_v17, %s1248_s5 }
  0x24   : > { %765 = vrot.lane.b32.xlu1 %v1075_v16, %s1249_s6 }
  0x28   : > { %763 = vrot.lane.b32.xlu1 %v1074_v17, %s1249_s6 }
  0x86   : > { %v485_v27 = vpop.permute.xlu1 %484 }
  0x87   : > { %v490_v30 = vsel %vm343_vm1, %v485_v27, 0  ;;  %v418_v27 = vld [vmem:[#allocation2] sm:$0xff] }
  0x8a   : > { %v480_v28 = vpop.permute.xlu1 %479 }
  0x8e   : > { %v627_v32 = vpop.permute.xlu1 %626 }
  0x8f   : > { %v632_v34 = vsel %vm343_vm1, %v627_v32, 0 }
  0x92   : > { %v625_v33 = vpop.permute.xlu1 %624 }
  0x96   : > { %v766_v35 = vpop.permute.xlu1 %765 }
  0x97   : > { %v771_v36 = vsel %vm343_vm1, %v766_v35, 0 }
  0x9a   : > { %v764_v37 = vpop.permute.xlu1 %763 }
  0xed   : > { %v384_v10 = vpop.f32.mrb[0].mxu0 }
  0xee   : > { %v393_v11 = vsel %vm1326_vm4, -1e+09, %v384_v10  ;;  %v1105_v12 = vpop.f32.mrb[1].mxu0 }
  0xef   : > { %v387_v13 = vpop.f32.mrb[2].mxu0  ;;  %v395_v14 = vsel %vm343_vm1, %v393_v11, -inf }
  0xf0   : > { %396 = vmax.xlane.f32.xlu0 %v395_v14  ;;  %v1106_v15 = vpop.f32.mrb[3].mxu0 }
 0x17d   : > { %v397_v19 = vpop.xlane.xlu0 %396 }
 0x17e   : > { %v1342_v20 = vmax.f32 %v1339_v18, %v397_v19 }
 0x180   : > { %v399_v21 = vsub.f32 %v1339_v18, %v1342_v20  ;;  %475 = vst.msk [vmem:[#allocation3] sm:$0xff] %vm416_vm5, %v1342_v20  ;;  %404 = vperm.xlu0 %1186, %v1342_v20  }
 0x182   : > { %v400_v2 = vmul.f32 1.442695, %v399_v21 }
 0x184   : > { %1188 = vset.pattern.permute.xlu0 %v1251_v61 }
 0x187   : > { %v533_v63 = vld [vmem:[#allocation3] sm:$0xff] }
 0x1ff   : > { %v405_v24 = vpop.permute.xlu0 %404 }
 0x200   : > { %v407_v25 = vsub.f32 %v393_v11, %v405_v24 }
 0x202   : > { %v408_v26 = vmul.f32 1.442695, %v407_v25 }
 0x204   : > { %1201 = vpow2.f32 %v408_v26 }
 0x205   : > { %1203 = vpow2.f32 %v400_v2 }
 0x20e   : > { %v1358_v29 = vpop.eup %1201 }
 0x20f   : > { %v425_v31 = vpack.c.bf16 %v1358_v29, %v1358_v29  ;;  %v1413_v11 = vpop.eup %1203  ;;  %v412_v16 = vsel %vm343_vm1, %v1358_v29, 0.0 }
 0x211   : > { %1110 = vmatmul.mubr.msk.bf16.vlgmr.msra.gmra.mrb[0].mxu1 %vm343_vm1, %v425_v31 }
 0x212   : > { %1114 = vmatpush3.bf16.xpose.msra.mxu1 %v490_v30  ;;  %1115 = vmatprep.mubr.msk.bf16.mxu1 %vm1244_vm0, %v1243_v0 }
 0x213   : > { %1125 = vmatprep.subr.bf16.mxu1 %v1243_v0 }
 0x219   : > { %1116 = vmatmul.mubr.msk.bf16.vlgmr.msra.gmra.mrb[4].mxu1 %vm343_vm1, %v480_v28 }
 0x21a   : > { %1126 = vmatpush3.bf16.xpose.msra.mxu1 %v632_v34  ;;  %1127 = vmatprep.mubr.msk.bf16.mxu1 %vm1244_vm0, %v1243_v0 }
 0x21b   : > { %1137 = vmatprep.subr.bf16.mxu1 %v1243_v0 }
 0x221   : > { %1128 = vmatmul.mubr.msk.bf16.vlgmr.msra.gmra.mrb[8].mxu1 %vm343_vm1, %v625_v33 }
 0x222   : > { %1138 = vmatpush3.bf16.xpose.msra.mxu1 %v771_v36  ;;  %1139 = vmatprep.mubr.msk.bf16.mxu1 %vm1244_vm0, %v1243_v0 }
 0x229   : > { %1140 = vmatmul.mubr.msk.bf16.vlgmr.msra.gmra.mrb[12].mxu1 %vm343_vm1, %v764_v37 }
 0x2e4   : > { %v1377_v38 = vpop.f32.mrb[0].mxu1 }
 0x2e5   : > { %v1111_v39 = vpop.f32.mrb[1].mxu1 }
 0x2e6   : > { %v470_v40 = vpop.f32.mrb[2].mxu1 }
 0x2e7   : > { %v1112_v41 = vpop.f32.mrb[3].mxu1 }
 0x2ec   : > { %v526_v42 = vpop.f32.mrb[4].mxu1 }
 0x2ed   : > { %v1381_v43 = vsel %vm1326_vm4, -1e+09, %v526_v42  ;;  %v1117_v44 = vpop.f32.mrb[5].mxu1 }
 0x2ee   : > { %v529_v45 = vpop.f32.mrb[6].mxu1  ;;  %v534_v46 = vsel %vm343_vm1, %v1381_v43, -inf }
 0x2ef   : > { %535 = vmax.xlane.f32.xlu1 %v534_v46  ;;  %v1118_v47 = vpop.f32.mrb[7].mxu1 }
 0x2f4   : > { %v668_v48 = vpop.f32.mrb[8].mxu1 }
 0x2f5   : > { %v1387_v49 = vsel %vm1326_vm4, -1e+09, %v668_v48  ;;  %v1129_v50 = vpop.f32.mrb[9].mxu1 }
 0x2f6   : > { %v671_v51 = vpop.f32.mrb[10].mxu1  ;;  %v676_v52 = vsel %vm343_vm1, %v1387_v49, -inf }
 0x2f7   : > { %677 = vmax.xlane.f32.xlu0 %v676_v52  ;;  %v1130_v53 = vpop.f32.mrb[11].mxu1 }
 0x2fc   : > { %v807_v54 = vpop.f32.mrb[12].mxu1 }
 0x2fd   : > { %v1393_v55 = vsel %vm1326_vm4, -1e+09, %v807_v54  ;;  %v1141_v56 = vpop.f32.mrb[13].mxu1 }
 0x2fe   : > { %v810_v57 = vpop.f32.mrb[14].mxu1  ;;  %v815_v58 = vsel %vm343_vm1, %v1393_v55, -inf }
 0x2ff   : > { %v1142_v60 = vpop.f32.mrb[15].mxu1  ;;  %816 = vmax.xlane.f32.xlu1 %v815_v58 }
 0x37c   : > { %v536_v62 = vpop.xlane.xlu1 %535 }
 0x37d   : > { %v537_v1 = vmax.f32 %v533_v63, %v536_v62 }
 0x37f   : > { %v538_v5 = vsub.f32 %v533_v63, %v537_v1  ;;  %623 = vst.msk [vmem:[#allocation3] sm:$0xff] %vm555_vm7, %v537_v1  ;;  %543 = vperm.xlu1 %1187, %v537_v1  }
 0x381   : > { %v539_v17 = vmul.f32 1.442695, %v538_v5 }
 0x383   : > { %568 = vrot.lane.b32.xlu1 %v1077_v3, %s1247_s30  ;;  %1205 = vpow2.f32 %v539_v17 }
 0x384   : > { %1189 = vset.pattern.permute.xlu1 %v1252_v6  ;;  %v678_v7 = vpop.xlane.xlu0 %677 }
 0x386   : > { %v1407_v8 = vld [vmem:[#allocation3] sm:$0xff] }
 0x387   : > { %v679_v9 = vmax.f32 %v1407_v8, %v678_v7 }
 0x389   : > { %v680_v10 = vsub.f32 %v1407_v8, %v679_v9  ;;  %762 = vst.msk [vmem:[#allocation3] sm:$0xff] %vm697_vm9, %v679_v9  ;;  %685 = vperm.xlu0 %1188, %v679_v9  }
 0x38c   : > { %v817_v12 = vpop.xlane.xlu1 %816 }
 0x38d   : > { %1190 = vset.pattern.permute.xlu0 %v1245_v4  ;;  %v1206_v18 = vpop.eup %1205 }
 0x38e   : > { %421 = vperm.xlu0 %1190, %v1413_v11  }
 0x390   : > { %v1417_v13 = vld [vmem:[#allocation3] sm:$0xff] }
 0x391   : > { %v1420_v14 = vmax.f32 %v1417_v13, %v817_v12 }
 0x392   : > { %1193 = vset.pattern.permute.xlu0 %v1252_v6 }
 0x393   : > { %v819_v15 = vsub.f32 %v1417_v13, %v1420_v14  ;;  %901 = vst.msk [vmem:[#allocation3] sm:$0xff] %vm836_vm10, %v1420_v14  ;;  %824 = vperm.xlu1 %1189, %v1420_v14  }
 0x395   : > { %v820_v56 = vmul.f32 1.442695, %v819_v15 }
 0x397   : > { %707 = vrot.lane.b32.xlu1 %v1077_v3, %s1248_s5 }
 0x398   : > { %1191 = vset.pattern.permute.xlu1 %v1250_v59 }
 0x39b   : > { %846 = vrot.lane.b32.xlu1 %v1077_v3, %s1249_s6 }
 0x3bf   : > { %413 = vadd.xlane.f32.xlu1 %v412_v16 }
 0x3d0   : > { %560 = vperm.xlu1 %1191, %v1206_v18  }
 0x3d4   : > { %1192 = vset.pattern.permute.xlu1 %v1251_v61 }
 0x3fe   : > { %v544_v19 = vpop.permute.xlu1 %543 }
 0x3ff   : > { %v546_v20 = vsub.f32 %v1381_v43, %v544_v19  ;;  %v681_v43 = vmul.f32 1.442695, %v680_v10 }
 0x401   : > { %v547_v21 = vmul.f32 1.442695, %v546_v20 }
 0x402   : > { %v569_v22 = vpop.permute.xlu1 %568 }
 0x403   : > { %1207 = vpow2.f32 %v547_v21  ;;  %v574_v23 = vsel %vm429_vm6, %v569_v22, 0 }
 0x404   : > { %1120 = vmatpush3.bf16.msra.mxu0 %v574_v23 }
 0x405   : > { %1131 = vmatprep.subr.bf16.mxu0 %v1243_v0 }
 0x408   : > { %v686_v24 = vpop.permute.xlu0 %685 }
 0x409   : > { %v688_v25 = vsub.f32 %v1387_v49, %v686_v24  ;;  %v410_v49 = vld [vmem:[#allocation4] sm:$0xff] }
 0x40a   : > { %v411_v50 = vmul.f32 %v1413_v11, %v410_v49 }
 0x40b   : > { %v689_v26 = vmul.f32 1.442695, %v688_v25 }
 0x40d   : > { %v1208_v28 = vpop.eup %1207  ;;  %1209 = vpow2.f32 %v689_v26  ;;  %v422_v29 = vpop.permute.xlu0 %421 }
 0x40e   : > { %v424_v30 = vmul.f32 %v422_v29, %v418_v27  ;;  %v551_v31 = vsel %vm343_vm1, %v1208_v28, 0.0  ;;  %v564_v32 = vpack.c.bf16 %v1208_v28, %v1208_v28 }
 0x40f   : > { %552 = vadd.xlane.f32.xlu0 %v551_v31 }
 0x410   : > { %v473_v33 = vadd.f32 %v1377_v38, %v424_v30  ;;  %1122 = vmatmul.mubr.msk.bf16.vlgmr.msra.gmra.mrb[4].mxu0 %vm343_vm1, %v564_v32 }
 0x411   : > { %1133 = vmatprep.mubr.msk.bf16.mxu0 %vm1244_vm0, %v1243_v0 }
 0x412   : > { %474 = vst.msk [vmem:[#allocation2] sm:$0xff] %vm343_vm1, %v473_v33  ;;  %v825_v34 = vpop.permute.xlu1 %824 }
 0x413   : > { %v827_v35 = vsub.f32 %v1393_v55, %v825_v34 }
 0x415   : > { %v828_v36 = vmul.f32 1.442695, %v827_v35 }
 0x416   : > { %v708_v37 = vpop.permute.xlu1 %707 }
 0x417   : > { %v1210_v39 = vpop.eup %1209  ;;  %1211 = vpow2.f32 %v828_v36  ;;  %v713_v40 = vsel %vm429_vm6, %v708_v37, 0 }
 0x418   : > { %1132 = vmatpush3.bf16.msra.mxu0 %v713_v40  ;;  %v693_v41 = vsel %vm343_vm1, %v1210_v39, 0.0  ;;  %v706_v38 = vpack.c.bf16 %v1210_v39, %v1210_v39  ;;  %1213 = vpow2.f32 %v681_v43 }
 0x419   : > { %694 = vadd.xlane.f32.xlu1 %v693_v41  ;;  %1143 = vmatprep.subr.bf16.mxu0 %v1243_v0  ;;  %1215 = vpow2.f32 %v820_v56  ;;  %v557_v20 = vld [vmem:[#allocation2] sm:$0xff] }
 0x41a   : > { %v847_v42 = vpop.permute.xlu1 %846 }
 0x41b   : > { %1134 = vmatmul.mubr.msk.bf16.vlgmr.msra.gmra.mrb[8].mxu0 %vm343_vm1, %v706_v38  ;;  %v852_v44 = vsel %vm429_vm6, %v847_v42, 0 }
 0x41c   : > { %1144 = vmatpush3.bf16.msra.mxu0 %v852_v44  ;;  %1145 = vmatprep.mubr.msk.bf16.mxu0 %vm1244_vm0, %v1243_v0  ;;  %vm935_vm0 = vcmask 257024  }
 0x421   : > { %v1212_v45 = vpop.eup %1211 }
 0x422   : > { %v832_v46 = vsel %vm343_vm1, %v1212_v45, 0.0  ;;  %v845_v47 = vpack.c.bf16 %v1212_v45, %v1212_v45  ;;  %v1214_v48 = vpop.eup %1213 }
 0x423   : > { %833 = vadd.xlane.f32.xlu0 %v832_v46  ;;  %v1216_v63 = vpop.eup %1215 }
 0x424   : > { %1146 = vmatmul.mubr.msk.bf16.vlgmr.msra.gmra.mrb[12].mxu0 %vm343_vm1, %v845_v47 }
 0x42a   : > { %702 = vperm.xlu1 %1192, %v1214_v48  }
 0x42e   : > { %1194 = vset.pattern.permute.xlu1 %v1245_v4 }
 0x44c   : > { %v414_v51 = vpop.xlane.xlu1 %413 }
 0x44d   : > { %v415_v52 = vadd.f32 %v414_v51, %v411_v50 }
 0x44f   : > { %417 = vst.msk [vmem:[#allocation4] sm:$0xff] %vm416_vm5, %v415_v52 }
 0x450   : > { %v561_v57 = vpop.permute.xlu1 %560 }
 0x451   : > { %v563_v21 = vmul.f32 %v561_v57, %v557_v20 }
 0x456   : > { %v549_v0 = vld [vmem:[#allocation4] sm:$0xff] }
 0x457   : > { %v550_v53 = vmul.f32 %v1206_v18, %v549_v0 }
 0x49c   : > { %v553_v54 = vpop.xlane.xlu0 %552 }
 0x49d   : > { %v554_v55 = vadd.f32 %v553_v54, %v550_v53 }
 0x49f   : > { %556 = vst.msk [vmem:[#allocation4] sm:$0xff] %vm555_vm7, %v554_v55 }
 0x4a6   : > { %v691_v58 = vld [vmem:[#allocation4] sm:$0xff]  ;;  %v695_v60 = vpop.xlane.xlu1 %694 }
 0x4a7   : > { %v692_v4 = vmul.f32 %v1214_v48, %v691_v58 }
 0x4a9   : > { %v696_v62 = vadd.f32 %v695_v60, %v692_v4 }
 0x4aa   : > { %v703_v24 = vpop.permute.xlu1 %702 }
 0x4ab   : > { %698 = vst.msk [vmem:[#allocation4] sm:$0xff] %vm697_vm9, %v696_v62 }
 0x4b0   : > { %v834_v3 = vpop.xlane.xlu0 %833 }
 0x4b2   : > { %v830_v1 = vld [vmem:[#allocation4] sm:$0xff] }
 0x4b3   : > { %v831_v2 = vmul.f32 %v1216_v63, %v830_v1 }
 0x4b5   : > { %v835_v5 = vadd.f32 %v834_v3, %v831_v2 }
 0x4b7   : > { %837 = vst.msk [vmem:[#allocation4] sm:$0xff] %vm836_vm10, %v835_v5 }
 0x4be   : > { %v905_v7 = vld [vmem:[#allocation4] sm:$0xff] }
 0x4bf   : > { %1217 = vrcp.f32 %v905_v7 }
 0x4c9   : > { %v1218_v8 = vpop.eup %1217 }
 0x4ca   : > { %910 = vperm.xlu1 %1194, %v1218_v8  }
 0x4ce   : > { %1196 = vset.pattern.permute.xlu1 %v1251_v61 }
 0x4cf   : > { %920 = vperm.xlu1 %1196, %v1218_v8  }
 0x4d3   : > { %1197 = vset.pattern.permute.xlu1 %v1252_v6 }
 0x4d4   : > { %925 = vperm.xlu1 %1197, %v1218_v8  }
 0x4e3   : > { %v610_v9 = vpop.f32.mrb[4].mxu0 }
 0x4e4   : > { %617 = vrot.lane.b32.xlu0 %v610_v9, %s1253_s10  ;;  %v1123_v10 = vpop.f32.mrb[5].mxu0 }
 0x4e5   : > { %v613_v11 = vpop.f32.mrb[6].mxu0 }
 0x4e6   : > { %v1124_v12 = vpop.f32.mrb[7].mxu0 }
 0x4ee   : > { %v749_v13 = vpop.f32.mrb[8].mxu0 }
 0x4ef   : > { %756 = vrot.lane.b32.xlu0 %v749_v13, %s1254_s11  ;;  %v1135_v14 = vpop.f32.mrb[9].mxu0 }
 0x4f0   : > { %v752_v15 = vpop.f32.mrb[10].mxu0 }
 0x4f1   : > { %v1136_v16 = vpop.f32.mrb[11].mxu0 }
 0x4f3   : > { %841 = vperm.xlu0 %1193, %v1216_v63  }
 0x4f7   : > { %v888_v17 = vpop.f32.mrb[12].mxu0  ;;  %1195 = vset.pattern.permute.xlu0 %v1250_v59 }
 0x4f8   : > { %895 = vrot.lane.b32.xlu0 %v888_v17, %s1255_s12  ;;  %v1147_v61 = vpop.f32.mrb[13].mxu0 }
 0x4f9   : > { %v891_v18 = vpop.f32.mrb[14].mxu0 }
 0x4fa   : > { %v1148_v19 = vpop.f32.mrb[15].mxu0 }
 0x4fc   : > { %915 = vperm.xlu0 %1195, %v1218_v8  }
 0x500   : > { %1198 = vset.pattern.permute.xlu0 %v1252_v6 }
 0x549   : > { %v911_v31 = vpop.permute.xlu1 %910 }
 0x54e   : > { %v921_v33 = vpop.permute.xlu1 %920 }
 0x553   : > { %v926_v40 = vpop.permute.xlu1 %925 }
 0x556   : > { %v618_v22 = vpop.permute.xlu0 %617 }
 0x557   : > { %v620_v23 = vadd.f32 %v618_v22, %v563_v21 }
 0x559   : > { %622 = vst.msk [vmem:[#allocation2] sm:$0xff] %vm621_vm11, %v620_v23 }
 0x560   : > { %v699_v25 = vld [vmem:[#allocation2] sm:$0xff] }
 0x561   : > { %v705_v26 = vmul.f32 %v703_v24, %v699_v25  ;;  %v757_v27 = vpop.permute.xlu0 %756 }
 0x563   : > { %v759_v59 = vadd.f32 %v757_v27, %v705_v26 }
 0x565   : > { %761 = vst.msk [vmem:[#allocation2] sm:$0xff] %vm760_vm12, %v759_v59 }
 0x56c   : > { %v838_v29 = vld [vmem:[#allocation2] sm:$0xff] }
 0x572   : > { %v842_v28 = vpop.permute.xlu0 %841 }
 0x573   : > { %v844_v30 = vmul.f32 %v842_v28, %v838_v29 }
 0x576   : > { %v896_v6 = vpop.permute.xlu0 %895 }
 0x577   : > { %v898_v32 = vadd.f32 %v896_v6, %v844_v30 }
 0x579   : > { %900 = vst.msk [vmem:[#allocation2] sm:$0xff] %vm899_vm13, %v898_v32 }
 0x57b   : > { %v916_v35 = vpop.permute.xlu0 %915 }
 0x580   : > { %v907_v34 = vld [vmem:[#allocation2] sm:$0xff] }
 0x581   : > { %v913_v36 = vmul.f32 %v911_v31, %v907_v34  ;;  %v923_v37 = vmul.f32 %v921_v33, %v907_v34  ;;  %v918_v39 = vmul.f32 %v916_v35, %v907_v34  ;;  %v928_v41 = vmul.f32 %v926_v40, %v907_v34 }
 0x583   : > { %v929_v38 = vsel %vm343_vm1, %v913_v36, %v918_v39 }
 0x584   : > { %v931_v42 = vsel %vm930_vm14, %v929_v38, %v923_v37 }
 0x585   : > { %v933_v43 = vsel %vm932_vm15, %v931_v42, %v928_v41 }
 0x586   : > { %v934_v44 = vpack.c.bf16 %v933_v43, %v933_v43 }
 0x588   : > { %936 = vst.msk [vmem:[%s325_s15] sm:$0xf] %vm935_vm0, %v934_v44 }
 0x589 PF: > { %s14_s17 = sadd.s32 1, %s1241_s17   ;;  %s1488_s15 = smov %s1237_s16 }
 0x58a   : > { %p11_p5 = scmp.ge.s32.totalorder %s14_s17, 4   ;;  %s1489_s16 = smov %s1491_s18 }
 0x58c   :  { %13 = sbr.rel (!%p11_p5) target bundleno = 2 (0x2), region = 83 }

</bundles_post_ra>
